<compile_context>
chip_gen: v7x
topology: tpu7x:2x2x1
jax: 0.10.0
libtpu: 0.0.40
codegen_flags: <defaults>
</compile_context>

<pallas_src>
import functools

import jax
import jax.numpy as jnp
from jax.experimental import pallas as pl
from jax.experimental.pallas import tpu as pltpu

# ------------------------- synthetic mini-BERT config -------------------------
VOCAB = 100
MAX_POS = 64
TYPE_VOCAB = 2
HIDDEN = 32          # bert hidden_size (small synthetic stand-in for 768)
NUM_HEADS = 4
HEAD_DIM = HIDDEN // NUM_HEADS
INTERMEDIATE = 64
NUM_LAYERS = 2
FEATURE_DIM = 256    # projection out_features (matches module default)
BATCH = 2
SEQ = 8
LN_EPS_BERT = 1e-12  # BERT LayerNorm eps
LN_EPS_TOP = 1e-5    # nn.LayerNorm default eps for the final layer_norm


# ------------------------------ in-kernel helpers ------------------------------
def _layer_norm(x, gamma, beta, eps):
    # Single pass: mean and mean-of-squares together, one rsqrt.
    mu = jnp.mean(x, axis=-1, keepdims=True)
    ms = jnp.mean(x * x, axis=-1, keepdims=True)
    inv = jax.lax.rsqrt(ms - mu * mu + eps)
    return (x - mu) * inv * gamma + beta


def _gelu(x):
    # TODO(synk): HF BERT uses exact erf-GELU; tanh approximation used here for
    # robust Mosaic lowering (difference is ~1e-3 on random activations).
    c = 0.7978845608028654  # sqrt(2/pi)
    return 0.5 * x * (1.0 + jnp.tanh(c * (x + 0.044715 * x * x * x)))


# --------------------------------- fused kernel ---------------------------------
def bert_stack_kernel(emb_ref, bias_ref,
                      wqkv_ref, bqkv_ref, wo_ref, bo_ref, ln1g_ref, ln1b_ref,
                      w1_ref, b1_ref, w2_ref, b2_ref, ln2g_ref, ln2b_ref,
                      embg_ref, embb_ref, projw_ref, projb_ref, lng_ref, lnb_ref,
                      o_ref, *, batch, seq):
    m = batch * seq
    nb = NUM_HEADS * batch

    def split_heads(t):
        # (B*S, H) lane slices -> (B, S, D) free leading splits -> stack on a new
        # outer axis -> (NH*B, S, D).  Only outer-dim / free reshapes; no
        # lane-splitting relayout.
        return jnp.stack(
            [t[:, h * HEAD_DIM:(h + 1) * HEAD_DIM].reshape(batch, seq, HEAD_DIM)
             for h in range(NUM_HEADS)], axis=0).reshape(nb, seq, HEAD_DIM)

    # ---- embedding LayerNorm (embeddings pre-flattened to (B*S, H) in wrapper) --
    x = _layer_norm(emb_ref[...], embg_ref[...], embb_ref[...], LN_EPS_BERT)
    attn_bias = bias_ref[...]                      # (NH*B, 1, S): 0 / -1e4 keys

    # ---- whole encoder stack, unrolled; weights + hidden state stay in VMEM ----
    for l in range(NUM_LAYERS):
        # Fused QKV projection: one (B*S,H)x(H,3H) matmul, bf16 in / f32 acc.
        # 1/sqrt(HEAD_DIM) is pre-folded into the Q columns of wqkv/bqkv.
        qkv = jnp.dot(x.astype(jnp.bfloat16), wqkv_ref[l],
                      preferred_element_type=jnp.float32) + bqkv_ref[l]

        q = split_heads(qkv[:, :HIDDEN])
        k = split_heads(qkv[:, HIDDEN:2 * HIDDEN])
        v = split_heads(qkv[:, 2 * HIDDEN:])

        # Two batched dot_generals + ONE softmax chain for all heads & batches.
        s = jnp.einsum('nqd,nkd->nqk', q, k,
                       preferred_element_type=jnp.float32) + attn_bias
        s = s - jnp.max(s, axis=-1, keepdims=True)
        p = jnp.exp(s)
        p = p * pl.reciprocal(jnp.sum(p, axis=-1, keepdims=True), approx=True)
        ctx = jnp.einsum('nqk,nkd->nqd', p, v,
                         preferred_element_type=jnp.float32)   # (NH*B, S, D)

        # Merge heads back onto the lane axis: (NH*B,S,D) -> (NH, B*S, D) (free)
        # -> lane concat -> (B*S, H).
        ctx = ctx.reshape(NUM_HEADS, m, HEAD_DIM)
        ctx = jnp.concatenate([ctx[h] for h in range(NUM_HEADS)], axis=-1)

        # Attention output projection + post-LN.
        attn_out = jnp.dot(ctx.astype(jnp.bfloat16), wo_ref[l],
                           preferred_element_type=jnp.float32) + bo_ref[l]
        x = _layer_norm(x + attn_out, ln1g_ref[l], ln1b_ref[l], LN_EPS_BERT)

        # FFN (GELU) + post-LN.
        h1 = _gelu(jnp.dot(x.astype(jnp.bfloat16), w1_ref[l],
                           preferred_element_type=jnp.float32) + b1_ref[l])
        ffn = jnp.dot(h1.astype(jnp.bfloat16), w2_ref[l],
                      preferred_element_type=jnp.float32) + b2_ref[l]
        x = _layer_norm(x + ffn, ln2g_ref[l], ln2b_ref[l], LN_EPS_BERT)

    # ---- CLS token -> projection -> final LayerNorm; lane-dense (B, 256) out ----
    cls = x.reshape(batch, seq, HIDDEN)[:, 0, :]          # free view + row-0 slice
    proj = jnp.dot(cls.astype(jnp.bfloat16), projw_ref[...],
                   preferred_element_type=jnp.float32) + projb_ref[...]
    o_ref[...] = _layer_norm(proj, lng_ref[...], lnb_ref[...], LN_EPS_TOP)


# ----------------------------------- wrapper ------------------------------------
def indobert_text_encoder_forward(params, input_ids, attention_mask, token_type_ids):
    B, S = input_ids.shape

    # Embedding gathers (glue, plain JAX), flattened wrapper-side to (B*S, H).
    pos_ids = jnp.arange(S, dtype=jnp.int32)
    emb = (jnp.take(params["word_emb"], input_ids, axis=0)
           + jnp.take(params["pos_emb"], pos_ids, axis=0)[None, :, :]
           + jnp.take(params["type_emb"], token_type_ids, axis=0))
    emb = emb.reshape(B * S, HIDDEN)

    # HF-style additive mask (0 attended / -1e4 padded keys), pre-tiled per head
    # so the kernel adds it directly to the (NH*B, S, S) score slab (n = h*B + b).
    attn_bias = (attention_mask.reshape(B, 1, S).astype(jnp.float32) - 1.0) * 1e4
    attn_bias = jnp.tile(attn_bias, (NUM_HEADS, 1, 1))

    args = [emb, attn_bias] + [params[k] for k in (
        "wqkv", "bqkv", "wo", "bo", "ln1_g", "ln1_b",
        "w1", "b1", "w2", "b2", "ln2_g", "ln2_b",
        "emb_ln_g", "emb_ln_b", "proj_w", "proj_b", "ln_g", "ln_b")]

    kernel = functools.partial(bert_stack_kernel, batch=B, seq=S)

    # grid=() : one invocation for the whole stack; every operand is a whole-array
    # VMEM block (total < 64 KiB), so there is no per-grid-step overhead and no
    # per-layer double buffering for this tiny config.
    # TODO(synk): at real IndoBERT sizes (H=768, I=3072, S<=512, L=12) reintroduce
    # a grid: a leading 'parallel' axis over sequence/batch tiles (uses v7x's 2nd
    # TensorCore), a trailing 'arbitrary' layer axis with per-layer BlockSpecs,
    # flash-style key tiling for lane-dense (multiple-of-128) softmax slabs,
    # >=256-wide matmul tiles on v6e/v7x (128 on v5e), and a VMEM budget derived
    # from pltpu.get_tpu_info() (64 MiB on v7x).
    return pl.pallas_call(
        kernel,
        out_shape=jax.ShapeDtypeStruct((B, FEATURE_DIM), jnp.float32),
        compiler_params=pltpu.CompilerParams(vmem_limit_bytes=32 * 1024 * 1024),
    )(*args)


# ----------------------------- deterministic params -----------------------------
def init_params(key):
    keys = iter(jax.random.split(key, 32))
    nrm = lambda shape: 0.02 * jax.random.normal(next(keys), shape, jnp.float32)
    L, H, I, F = NUM_LAYERS, HIDDEN, INTERMEDIATE, FEATURE_DIM
    bf16 = jnp.bfloat16

    # Fold the 1/sqrt(HEAD_DIM) attention scale into the Q columns of the fused
    # QKV weight & bias once at init time (removes a per-layer VPU multiply).
    scale = 1.0 / (HEAD_DIM ** 0.5)
    wqkv = nrm((L, H, 3 * H)).at[:, :, :H].multiply(scale)
    bqkv = jnp.zeros((L, 1, 3 * H), jnp.float32).at[:, :, :H].multiply(scale)

    return {
        "word_emb": nrm((VOCAB, H)),
        "pos_emb": nrm((MAX_POS, H)),
        "type_emb": nrm((TYPE_VOCAB, H)),
        "emb_ln_g": jnp.ones((1, H), jnp.float32),
        "emb_ln_b": jnp.zeros((1, H), jnp.float32),
        # per-layer weights stacked along a leading [L] axis; matmul weights bf16
        "wqkv": wqkv.astype(bf16),
        "bqkv": bqkv,
        "wo": nrm((L, H, H)).astype(bf16),
        "bo": jnp.zeros((L, 1, H), jnp.float32),
        "ln1_g": jnp.ones((L, 1, H), jnp.float32),
        "ln1_b": jnp.zeros((L, 1, H), jnp.float32),
        "w1": nrm((L, H, I)).astype(bf16),
        "b1": jnp.zeros((L, 1, I), jnp.float32),
        "w2": nrm((L, I, H)).astype(bf16),
        "b2": jnp.zeros((L, 1, H), jnp.float32),
        "ln2_g": jnp.ones((L, 1, H), jnp.float32),
        "ln2_b": jnp.zeros((L, 1, H), jnp.float32),
        "proj_w": nrm((H, F)).astype(bf16),
        "proj_b": jnp.zeros((1, F), jnp.float32),
        "ln_g": jnp.ones((1, F), jnp.float32),
        "ln_b": jnp.zeros((1, F), jnp.float32),
    }


# ------------------------------------ main ---------------------------------------
if __name__ == "__main__":
    key = jax.random.PRNGKey(0)
    params = init_params(key)

    # Synthetic "tokenizer output": fixed-length batch, no padding -> mask all ones.
    ids_key = jax.random.fold_in(key, 12345)
    input_ids = jax.random.randint(ids_key, (BATCH, SEQ), 0, VOCAB, dtype=jnp.int32)
    attention_mask = jnp.ones((BATCH, SEQ), jnp.float32)
    token_type_ids = jnp.zeros((BATCH, SEQ), jnp.int32)

    fwd = jax.jit(indobert_text_encoder_forward)
    out = fwd(params, input_ids, attention_mask, token_type_ids)
    out = jax.block_until_ready(out)
    assert out.shape == (BATCH, FEATURE_DIM), out.shape
    assert jnp.all(jnp.isfinite(out))
    print("KERNEL_OK")
</pallas_src>

<mosaic_0001>
module attributes {stable_mosaic.version = 11 : i64} {
  func.func @bert_stack_kernel(%arg0: memref<16x32xf32, #tpu.memory_space<vmem>>, %arg1: memref<8x1x8xf32, #tpu.memory_space<vmem>>, %arg2: memref<2x32x96xbf16, #tpu.memory_space<vmem>>, %arg3: memref<2x1x96xf32, #tpu.memory_space<vmem>>, %arg4: memref<2x32x32xbf16, #tpu.memory_space<vmem>>, %arg5: memref<2x1x32xf32, #tpu.memory_space<vmem>>, %arg6: memref<2x1x32xf32, #tpu.memory_space<vmem>>, %arg7: memref<2x1x32xf32, #tpu.memory_space<vmem>>, %arg8: memref<2x32x64xbf16, #tpu.memory_space<vmem>>, %arg9: memref<2x1x64xf32, #tpu.memory_space<vmem>>, %arg10: memref<2x64x32xbf16, #tpu.memory_space<vmem>>, %arg11: memref<2x1x32xf32, #tpu.memory_space<vmem>>, %arg12: memref<2x1x32xf32, #tpu.memory_space<vmem>>, %arg13: memref<2x1x32xf32, #tpu.memory_space<vmem>>, %arg14: memref<1x32xf32, #tpu.memory_space<vmem>>, %arg15: memref<1x32xf32, #tpu.memory_space<vmem>>, %arg16: memref<32x256xbf16, #tpu.memory_space<vmem>>, %arg17: memref<1x256xf32, #tpu.memory_space<vmem>>, %arg18: memref<1x256xf32, #tpu.memory_space<vmem>>, %arg19: memref<1x256xf32, #tpu.memory_space<vmem>>, %arg20: memref<2x256xf32, #tpu.memory_space<vmem>>) attributes {dimension_semantics = [], scalar_prefetch = 0 : i64, scratch_operands = 0 : i64, tpu.core_type = #tpu.core_type<tc>} {
    %c0 = arith.constant 0 : index
    %c0_0 = arith.constant 0 : index
    %0 = vector.load %arg0[%c0, %c0_0] : memref<16x32xf32, #tpu.memory_space<vmem>>, vector<16x32xf32>
    %c0_1 = arith.constant 0 : index
    %c0_2 = arith.constant 0 : index
    %1 = vector.load %arg14[%c0_1, %c0_2] : memref<1x32xf32, #tpu.memory_space<vmem>>, vector<1x32xf32>
    %c0_3 = arith.constant 0 : index
    %c0_4 = arith.constant 0 : index
    %2 = vector.load %arg15[%c0_3, %c0_4] : memref<1x32xf32, #tpu.memory_space<vmem>>, vector<1x32xf32>
    %cst = arith.constant dense<0.000000e+00> : vector<16xf32>
    %3 = vector.multi_reduction <add>, %0, %cst [1] : vector<16x32xf32> to vector<16xf32>
    %4 = vector.shape_cast %3 : vector<16xf32> to vector<16x1xf32>
    %cst_5 = arith.constant 3.200000e+01 : f32
    %5 = vector.broadcast %cst_5 : f32 to vector<16x1xf32>
    %6 = arith.divf %4, %5 : vector<16x1xf32>
    %7 = arith.mulf %0, %0 : vector<16x32xf32>
    %cst_6 = arith.constant dense<0.000000e+00> : vector<16xf32>
    %8 = vector.multi_reduction <add>, %7, %cst_6 [1] : vector<16x32xf32> to vector<16xf32>
    %9 = vector.shape_cast %8 : vector<16xf32> to vector<16x1xf32>
    %cst_7 = arith.constant 3.200000e+01 : f32
    %10 = vector.broadcast %cst_7 : f32 to vector<16x1xf32>
    %11 = arith.divf %9, %10 : vector<16x1xf32>
    %12 = arith.mulf %6, %6 : vector<16x1xf32>
    %13 = arith.subf %11, %12 : vector<16x1xf32>
    %cst_8 = arith.constant 9.99999996E-13 : f32
    %14 = vector.broadcast %cst_8 : f32 to vector<16x1xf32>
    %15 = arith.addf %13, %14 : vector<16x1xf32>
    %16 = math.rsqrt %15 : vector<16x1xf32>
    %17 = vector.broadcast %6 : vector<16x1xf32> to vector<16x32xf32>
    %18 = arith.subf %0, %17 : vector<16x32xf32>
    %19 = vector.broadcast %16 : vector<16x1xf32> to vector<16x32xf32>
    %20 = arith.mulf %18, %19 : vector<16x32xf32>
    %21 = vector.broadcast %1 : vector<1x32xf32> to vector<16x32xf32>
    %22 = arith.mulf %20, %21 : vector<16x32xf32>
    %23 = vector.broadcast %2 : vector<1x32xf32> to vector<16x32xf32>
    %24 = arith.addf %22, %23 : vector<16x32xf32>
    %c0_9 = arith.constant 0 : index
    %c0_10 = arith.constant 0 : index
    %c0_11 = arith.constant 0 : index
    %25 = vector.load %arg1[%c0_9, %c0_10, %c0_11] : memref<8x1x8xf32, #tpu.memory_space<vmem>>, vector<8x1x8xf32>
    %26 = arith.truncf %24 : vector<16x32xf32> to vector<16x32xbf16>
    %c0_12 = arith.constant 0 : index
    %c0_13 = arith.constant 0 : index
    %c0_14 = arith.constant 0 : index
    %27 = vector.load %arg2[%c0_12, %c0_13, %c0_14] : memref<2x32x96xbf16, #tpu.memory_space<vmem>>, vector<1x32x96xbf16>
    %28 = vector.shape_cast %27 : vector<1x32x96xbf16> to vector<32x96xbf16>
    %cst_15 = arith.constant dense<0.000000e+00> : vector<16x96xf32>
    %29 = tpu.matmul %26, %28, %cst_15 {dimension_numbers = #tpu.dot_dimension_numbers<[1], [0], [0], [1], [0, 0, 1, 1], [], []>} : vector<16x32xbf16>, vector<32x96xbf16>, vector<16x96xf32> -> vector<16x96xf32>
    %c0_16 = arith.constant 0 : index
    %c0_17 = arith.constant 0 : index
    %c0_18 = arith.constant 0 : index
    %30 = vector.load %arg3[%c0_16, %c0_17, %c0_18] : memref<2x1x96xf32, #tpu.memory_space<vmem>>, vector<1x1x96xf32>
    %31 = vector.shape_cast %30 : vector<1x1x96xf32> to vector<1x96xf32>
    %32 = vector.broadcast %31 : vector<1x96xf32> to vector<16x96xf32>
    %33 = arith.addf %29, %32 : vector<16x96xf32>
    %34 = vector.extract_strided_slice %33 {offsets = [0, 0], sizes = [16, 32], strides = [1, 1]} : vector<16x96xf32> to vector<16x32xf32>
    %35 = vector.extract_strided_slice %34 {offsets = [0, 0], sizes = [16, 8], strides = [1, 1]} : vector<16x32xf32> to vector<16x8xf32>
    %36 = vector.shape_cast %35 : vector<16x8xf32> to vector<2x8x8xf32>
    %37 = vector.extract_strided_slice %34 {offsets = [0, 8], sizes = [16, 8], strides = [1, 1]} : vector<16x32xf32> to vector<16x8xf32>
    %38 = vector.shape_cast %37 : vector<16x8xf32> to vector<2x8x8xf32>
    %39 = vector.extract_strided_slice %34 {offsets = [0, 16], sizes = [16, 8], strides = [1, 1]} : vector<16x32xf32> to vector<16x8xf32>
    %40 = vector.shape_cast %39 : vector<16x8xf32> to vector<2x8x8xf32>
    %41 = vector.extract_strided_slice %34 {offsets = [0, 24], sizes = [16, 8], strides = [1, 1]} : vector<16x32xf32> to vector<16x8xf32>
    %42 = vector.shape_cast %41 : vector<16x8xf32> to vector<2x8x8xf32>
    %43 = vector.shape_cast %36 : vector<2x8x8xf32> to vector<1x2x8x8xf32>
    %44 = vector.shape_cast %38 : vector<2x8x8xf32> to vector<1x2x8x8xf32>
    %45 = vector.shape_cast %40 : vector<2x8x8xf32> to vector<1x2x8x8xf32>
    %46 = vector.shape_cast %42 : vector<2x8x8xf32> to vector<1x2x8x8xf32>
    %47 = tpu.concatenate %43, %44, %45, %46 in 0 : vector<1x2x8x8xf32>, vector<1x2x8x8xf32>, vector<1x2x8x8xf32>, vector<1x2x8x8xf32> -> vector<4x2x8x8xf32>
    %48 = vector.shape_cast %47 : vector<4x2x8x8xf32> to vector<8x8x8xf32>
    %49 = vector.extract_strided_slice %33 {offsets = [0, 32], sizes = [16, 32], strides = [1, 1]} : vector<16x96xf32> to vector<16x32xf32>
    %50 = vector.extract_strided_slice %49 {offsets = [0, 0], sizes = [16, 8], strides = [1, 1]} : vector<16x32xf32> to vector<16x8xf32>
    %51 = vector.shape_cast %50 : vector<16x8xf32> to vector<2x8x8xf32>
    %52 = vector.extract_strided_slice %49 {offsets = [0, 8], sizes = [16, 8], strides = [1, 1]} : vector<16x32xf32> to vector<16x8xf32>
    %53 = vector.shape_cast %52 : vector<16x8xf32> to vector<2x8x8xf32>
    %54 = vector.extract_strided_slice %49 {offsets = [0, 16], sizes = [16, 8], strides = [1, 1]} : vector<16x32xf32> to vector<16x8xf32>
    %55 = vector.shape_cast %54 : vector<16x8xf32> to vector<2x8x8xf32>
    %56 = vector.extract_strided_slice %49 {offsets = [0, 24], sizes = [16, 8], strides = [1, 1]} : vector<16x32xf32> to vector<16x8xf32>
    %57 = vector.shape_cast %56 : vector<16x8xf32> to vector<2x8x8xf32>
    %58 = vector.shape_cast %51 : vector<2x8x8xf32> to vector<1x2x8x8xf32>
    %59 = vector.shape_cast %53 : vector<2x8x8xf32> to vector<1x2x8x8xf32>
    %60 = vector.shape_cast %55 : vector<2x8x8xf32> to vector<1x2x8x8xf32>
    %61 = vector.shape_cast %57 : vector<2x8x8xf32> to vector<1x2x8x8xf32>
    %62 = tpu.concatenate %58, %59, %60, %61 in 0 : vector<1x2x8x8xf32>, vector<1x2x8x8xf32>, vector<1x2x8x8xf32>, vector<1x2x8x8xf32> -> vector<4x2x8x8xf32>
    %63 = vector.shape_cast %62 : vector<4x2x8x8xf32> to vector<8x8x8xf32>
    %64 = vector.extract_strided_slice %33 {offsets = [0, 64], sizes = [16, 32], strides = [1, 1]} : vector<16x96xf32> to vector<16x32xf32>
    %65 = vector.extract_strided_slice %64 {offsets = [0, 0], sizes = [16, 8], strides = [1, 1]} : vector<16x32xf32> to vector<16x8xf32>
    %66 = vector.shape_cast %65 : vector<16x8xf32> to vector<2x8x8xf32>
    %67 = vector.extract_strided_slice %64 {offsets = [0, 8], sizes = [16, 8], strides = [1, 1]} : vector<16x32xf32> to vector<16x8xf32>
    %68 = vector.shape_cast %67 : vector<16x8xf32> to vector<2x8x8xf32>
    %69 = vector.extract_strided_slice %64 {offsets = [0, 16], sizes = [16, 8], strides = [1, 1]} : vector<16x32xf32> to vector<16x8xf32>
    %70 = vector.shape_cast %69 : vector<16x8xf32> to vector<2x8x8xf32>
    %71 = vector.extract_strided_slice %64 {offsets = [0, 24], sizes = [16, 8], strides = [1, 1]} : vector<16x32xf32> to vector<16x8xf32>
    %72 = vector.shape_cast %71 : vector<16x8xf32> to vector<2x8x8xf32>
    %73 = vector.shape_cast %66 : vector<2x8x8xf32> to vector<1x2x8x8xf32>
    %74 = vector.shape_cast %68 : vector<2x8x8xf32> to vector<1x2x8x8xf32>
    %75 = vector.shape_cast %70 : vector<2x8x8xf32> to vector<1x2x8x8xf32>
    %76 = vector.shape_cast %72 : vector<2x8x8xf32> to vector<1x2x8x8xf32>
    %77 = tpu.concatenate %73, %74, %75, %76 in 0 : vector<1x2x8x8xf32>, vector<1x2x8x8xf32>, vector<1x2x8x8xf32>, vector<1x2x8x8xf32> -> vector<4x2x8x8xf32>
    %78 = vector.shape_cast %77 : vector<4x2x8x8xf32> to vector<8x8x8xf32>
    "tpu.trace_start"() <{level = 10 : i32, message = "nqd,nkd->nqk"}> : () -> ()
    %cst_19 = arith.constant dense<0.000000e+00> : vector<8x8x8xf32>
    %79 = tpu.matmul %48, %63, %cst_19 {dimension_numbers = #tpu.dot_dimension_numbers<[2], [2], [1], [1], [0, 0, 0, 1, 1, 1], [0], [0]>} : vector<8x8x8xf32>, vector<8x8x8xf32>, vector<8x8x8xf32> -> vector<8x8x8xf32>
    "tpu.trace_stop"() : () -> ()
    %80 = vector.broadcast %25 : vector<8x1x8xf32> to vector<8x8x8xf32>
    %81 = arith.addf %79, %80 : vector<8x8x8xf32>
    %cst_20 = arith.constant dense<0xFF800000> : vector<8x8xf32>
    %82 = vector.multi_reduction <maximumf>, %81, %cst_20 [2] : vector<8x8x8xf32> to vector<8x8xf32>
    %83 = vector.shape_cast %82 : vector<8x8xf32> to vector<8x8x1xf32>
    %84 = vector.broadcast %83 : vector<8x8x1xf32> to vector<8x8x8xf32>
    %85 = arith.subf %81, %84 : vector<8x8x8xf32>
    %86 = math.exp %85 : vector<8x8x8xf32>
    %cst_21 = arith.constant dense<0.000000e+00> : vector<8x8xf32>
    %87 = vector.multi_reduction <add>, %86, %cst_21 [2] : vector<8x8x8xf32> to vector<8x8xf32>
    %88 = vector.shape_cast %87 : vector<8x8xf32> to vector<8x8x1xf32>
    %89 = tpu.reciprocal %88 {approx = true} : vector<8x8x1xf32> -> vector<8x8x1xf32>
    %90 = vector.broadcast %89 : vector<8x8x1xf32> to vector<8x8x8xf32>
    %91 = arith.mulf %86, %90 : vector<8x8x8xf32>
    "tpu.trace_start"() <{level = 10 : i32, message = "nqk,nkd->nqd"}> : () -> ()
    %cst_22 = arith.constant dense<0.000000e+00> : vector<8x8x8xf32>
    %92 = tpu.matmul %91, %78, %cst_22 {dimension_numbers = #tpu.dot_dimension_numbers<[2], [1], [1], [2], [0, 0, 0, 1, 1, 2], [0], [0]>} : vector<8x8x8xf32>, vector<8x8x8xf32>, vector<8x8x8xf32> -> vector<8x8x8xf32>
    "tpu.trace_stop"() : () -> ()
    %93 = vector.shape_cast %92 : vector<8x8x8xf32> to vector<4x16x8xf32>
    %94 = vector.extract_strided_slice %93 {offsets = [0, 0, 0], sizes = [1, 16, 8], strides = [1, 1, 1]} : vector<4x16x8xf32> to vector<1x16x8xf32>
    %95 = vector.shape_cast %94 : vector<1x16x8xf32> to vector<16x8xf32>
    %96 = vector.extract_strided_slice %93 {offsets = [1, 0, 0], sizes = [1, 16, 8], strides = [1, 1, 1]} : vector<4x16x8xf32> to vector<1x16x8xf32>
    %97 = vector.shape_cast %96 : vector<1x16x8xf32> to vector<16x8xf32>
    %98 = vector.extract_strided_slice %93 {offsets = [2, 0, 0], sizes = [1, 16, 8], strides = [1, 1, 1]} : vector<4x16x8xf32> to vector<1x16x8xf32>
    %99 = vector.shape_cast %98 : vector<1x16x8xf32> to vector<16x8xf32>
    %100 = vector.extract_strided_slice %93 {offsets = [3, 0, 0], sizes = [1, 16, 8], strides = [1, 1, 1]} : vector<4x16x8xf32> to vector<1x16x8xf32>
    %101 = vector.shape_cast %100 : vector<1x16x8xf32> to vector<16x8xf32>
    %102 = tpu.concatenate %95, %97, %99, %101 in 1 : vector<16x8xf32>, vector<16x8xf32>, vector<16x8xf32>, vector<16x8xf32> -> vector<16x32xf32>
    %103 = arith.truncf %102 : vector<16x32xf32> to vector<16x32xbf16>
    %c0_23 = arith.constant 0 : index
    %c0_24 = arith.constant 0 : index
    %c0_25 = arith.constant 0 : index
    %104 = vector.load %arg4[%c0_23, %c0_24, %c0_25] : memref<2x32x32xbf16, #tpu.memory_space<vmem>>, vector<1x32x32xbf16>
    %105 = vector.shape_cast %104 : vector<1x32x32xbf16> to vector<32x32xbf16>
    %cst_26 = arith.constant dense<0.000000e+00> : vector<16x32xf32>
    %106 = tpu.matmul %103, %105, %cst_26 {dimension_numbers = #tpu.dot_dimension_numbers<[1], [0], [0], [1], [0, 0, 1, 1], [], []>} : vector<16x32xbf16>, vector<32x32xbf16>, vector<16x32xf32> -> vector<16x32xf32>
    %c0_27 = arith.constant 0 : index
    %c0_28 = arith.constant 0 : index
    %c0_29 = arith.constant 0 : index
    %107 = vector.load %arg5[%c0_27, %c0_28, %c0_29] : memref<2x1x32xf32, #tpu.memory_space<vmem>>, vector<1x1x32xf32>
    %108 = vector.shape_cast %107 : vector<1x1x32xf32> to vector<1x32xf32>
    %109 = vector.broadcast %108 : vector<1x32xf32> to vector<16x32xf32>
    %110 = arith.addf %106, %109 : vector<16x32xf32>
    %111 = arith.addf %24, %110 : vector<16x32xf32>
    %c0_30 = arith.constant 0 : index
    %c0_31 = arith.constant 0 : index
    %c0_32 = arith.constant 0 : index
    %112 = vector.load %arg6[%c0_30, %c0_31, %c0_32] : memref<2x1x32xf32, #tpu.memory_space<vmem>>, vector<1x1x32xf32>
    %113 = vector.shape_cast %112 : vector<1x1x32xf32> to vector<1x32xf32>
    %c0_33 = arith.constant 0 : index
    %c0_34 = arith.constant 0 : index
    %c0_35 = arith.constant 0 : index
    %114 = vector.load %arg7[%c0_33, %c0_34, %c0_35] : memref<2x1x32xf32, #tpu.memory_space<vmem>>, vector<1x1x32xf32>
    %115 = vector.shape_cast %114 : vector<1x1x32xf32> to vector<1x32xf32>
    %cst_36 = arith.constant dense<0.000000e+00> : vector<16xf32>
    %116 = vector.multi_reduction <add>, %111, %cst_36 [1] : vector<16x32xf32> to vector<16xf32>
    %117 = vector.shape_cast %116 : vector<16xf32> to vector<16x1xf32>
    %cst_37 = arith.constant 3.200000e+01 : f32
    %118 = vector.broadcast %cst_37 : f32 to vector<16x1xf32>
    %119 = arith.divf %117, %118 : vector<16x1xf32>
    %120 = arith.mulf %111, %111 : vector<16x32xf32>
    %cst_38 = arith.constant dense<0.000000e+00> : vector<16xf32>
    %121 = vector.multi_reduction <add>, %120, %cst_38 [1] : vector<16x32xf32> to vector<16xf32>
    %122 = vector.shape_cast %121 : vector<16xf32> to vector<16x1xf32>
    %cst_39 = arith.constant 3.200000e+01 : f32
    %123 = vector.broadcast %cst_39 : f32 to vector<16x1xf32>
    %124 = arith.divf %122, %123 : vector<16x1xf32>
    %125 = arith.mulf %119, %119 : vector<16x1xf32>
    %126 = arith.subf %124, %125 : vector<16x1xf32>
    %cst_40 = arith.constant 9.99999996E-13 : f32
    %127 = vector.broadcast %cst_40 : f32 to vector<16x1xf32>
    %128 = arith.addf %126, %127 : vector<16x1xf32>
    %129 = math.rsqrt %128 : vector<16x1xf32>
    %130 = vector.broadcast %119 : vector<16x1xf32> to vector<16x32xf32>
    %131 = arith.subf %111, %130 : vector<16x32xf32>
    %132 = vector.broadcast %129 : vector<16x1xf32> to vector<16x32xf32>
    %133 = arith.mulf %131, %132 : vector<16x32xf32>
    %134 = vector.broadcast %113 : vector<1x32xf32> to vector<16x32xf32>
    %135 = arith.mulf %133, %134 : vector<16x32xf32>
    %136 = vector.broadcast %115 : vector<1x32xf32> to vector<16x32xf32>
    %137 = arith.addf %135, %136 : vector<16x32xf32>
    %138 = arith.truncf %137 : vector<16x32xf32> to vector<16x32xbf16>
    %c0_41 = arith.constant 0 : index
    %c0_42 = arith.constant 0 : index
    %c0_43 = arith.constant 0 : index
    %139 = vector.load %arg8[%c0_41, %c0_42, %c0_43] : memref<2x32x64xbf16, #tpu.memory_space<vmem>>, vector<1x32x64xbf16>
    %140 = vector.shape_cast %139 : vector<1x32x64xbf16> to vector<32x64xbf16>
    %cst_44 = arith.constant dense<0.000000e+00> : vector<16x64xf32>
    %141 = tpu.matmul %138, %140, %cst_44 {dimension_numbers = #tpu.dot_dimension_numbers<[1], [0], [0], [1], [0, 0, 1, 1], [], []>} : vector<16x32xbf16>, vector<32x64xbf16>, vector<16x64xf32> -> vector<16x64xf32>
    %c0_45 = arith.constant 0 : index
    %c0_46 = arith.constant 0 : index
    %c0_47 = arith.constant 0 : index
    %142 = vector.load %arg9[%c0_45, %c0_46, %c0_47] : memref<2x1x64xf32, #tpu.memory_space<vmem>>, vector<1x1x64xf32>
    %143 = vector.shape_cast %142 : vector<1x1x64xf32> to vector<1x64xf32>
    %144 = vector.broadcast %143 : vector<1x64xf32> to vector<16x64xf32>
    %145 = arith.addf %141, %144 : vector<16x64xf32>
    %cst_48 = arith.constant 5.000000e-01 : f32
    %146 = vector.broadcast %cst_48 : f32 to vector<16x64xf32>
    %147 = arith.mulf %146, %145 : vector<16x64xf32>
    %cst_49 = arith.constant 4.471500e-02 : f32
    %148 = vector.broadcast %cst_49 : f32 to vector<16x64xf32>
    %149 = arith.mulf %148, %145 : vector<16x64xf32>
    %150 = arith.mulf %149, %145 : vector<16x64xf32>
    %151 = arith.mulf %150, %145 : vector<16x64xf32>
    %152 = arith.addf %145, %151 : vector<16x64xf32>
    %cst_50 = arith.constant 0.797884583 : f32
    %153 = vector.broadcast %cst_50 : f32 to vector<16x64xf32>
    %154 = arith.mulf %153, %152 : vector<16x64xf32>
    %155 = math.tanh %154 : vector<16x64xf32>
    %cst_51 = arith.constant 1.000000e+00 : f32
    %156 = vector.broadcast %cst_51 : f32 to vector<16x64xf32>
    %157 = arith.addf %156, %155 : vector<16x64xf32>
    %158 = arith.mulf %147, %157 : vector<16x64xf32>
    %159 = arith.truncf %158 : vector<16x64xf32> to vector<16x64xbf16>
    %c0_52 = arith.constant 0 : index
    %c0_53 = arith.constant 0 : index
    %c0_54 = arith.constant 0 : index
    %160 = vector.load %arg10[%c0_52, %c0_53, %c0_54] : memref<2x64x32xbf16, #tpu.memory_space<vmem>>, vector<1x64x32xbf16>
    %161 = vector.shape_cast %160 : vector<1x64x32xbf16> to vector<64x32xbf16>
    %cst_55 = arith.constant dense<0.000000e+00> : vector<16x32xf32>
    %162 = tpu.matmul %159, %161, %cst_55 {dimension_numbers = #tpu.dot_dimension_numbers<[1], [0], [0], [1], [0, 0, 1, 1], [], []>} : vector<16x64xbf16>, vector<64x32xbf16>, vector<16x32xf32> -> vector<16x32xf32>
    %c0_56 = arith.constant 0 : index
    %c0_57 = arith.constant 0 : index
    %c0_58 = arith.constant 0 : index
    %163 = vector.load %arg11[%c0_56, %c0_57, %c0_58] : memref<2x1x32xf32, #tpu.memory_space<vmem>>, vector<1x1x32xf32>
    %164 = vector.shape_cast %163 : vector<1x1x32xf32> to vector<1x32xf32>
    %165 = vector.broadcast %164 : vector<1x32xf32> to vector<16x32xf32>
    %166 = arith.addf %162, %165 : vector<16x32xf32>
    %167 = arith.addf %137, %166 : vector<16x32xf32>
    %c0_59 = arith.constant 0 : index
    %c0_60 = arith.constant 0 : index
    %c0_61 = arith.constant 0 : index
    %168 = vector.load %arg12[%c0_59, %c0_60, %c0_61] : memref<2x1x32xf32, #tpu.memory_space<vmem>>, vector<1x1x32xf32>
    %169 = vector.shape_cast %168 : vector<1x1x32xf32> to vector<1x32xf32>
    %c0_62 = arith.constant 0 : index
    %c0_63 = arith.constant 0 : index
    %c0_64 = arith.constant 0 : index
    %170 = vector.load %arg13[%c0_62, %c0_63, %c0_64] : memref<2x1x32xf32, #tpu.memory_space<vmem>>, vector<1x1x32xf32>
    %171 = vector.shape_cast %170 : vector<1x1x32xf32> to vector<1x32xf32>
    %cst_65 = arith.constant dense<0.000000e+00> : vector<16xf32>
    %172 = vector.multi_reduction <add>, %167, %cst_65 [1] : vector<16x32xf32> to vector<16xf32>
    %173 = vector.shape_cast %172 : vector<16xf32> to vector<16x1xf32>
    %cst_66 = arith.constant 3.200000e+01 : f32
    %174 = vector.broadcast %cst_66 : f32 to vector<16x1xf32>
    %175 = arith.divf %173, %174 : vector<16x1xf32>
    %176 = arith.mulf %167, %167 : vector<16x32xf32>
    %cst_67 = arith.constant dense<0.000000e+00> : vector<16xf32>
    %177 = vector.multi_reduction <add>, %176, %cst_67 [1] : vector<16x32xf32> to vector<16xf32>
    %178 = vector.shape_cast %177 : vector<16xf32> to vector<16x1xf32>
    %cst_68 = arith.constant 3.200000e+01 : f32
    %179 = vector.broadcast %cst_68 : f32 to vector<16x1xf32>
    %180 = arith.divf %178, %179 : vector<16x1xf32>
    %181 = arith.mulf %175, %175 : vector<16x1xf32>
    %182 = arith.subf %180, %181 : vector<16x1xf32>
    %cst_69 = arith.constant 9.99999996E-13 : f32
    %183 = vector.broadcast %cst_69 : f32 to vector<16x1xf32>
    %184 = arith.addf %182, %183 : vector<16x1xf32>
    %185 = math.rsqrt %184 : vector<16x1xf32>
    %186 = vector.broadcast %175 : vector<16x1xf32> to vector<16x32xf32>
    %187 = arith.subf %167, %186 : vector<16x32xf32>
    %188 = vector.broadcast %185 : vector<16x1xf32> to vector<16x32xf32>
    %189 = arith.mulf %187, %188 : vector<16x32xf32>
    %190 = vector.broadcast %169 : vector<1x32xf32> to vector<16x32xf32>
    %191 = arith.mulf %189, %190 : vector<16x32xf32>
    %192 = vector.broadcast %171 : vector<1x32xf32> to vector<16x32xf32>
    %193 = arith.addf %191, %192 : vector<16x32xf32>
    %194 = arith.truncf %193 : vector<16x32xf32> to vector<16x32xbf16>
    %c1 = arith.constant 1 : index
    %c0_70 = arith.constant 0 : index
    %c0_71 = arith.constant 0 : index
    %195 = vector.load %arg2[%c1, %c0_70, %c0_71] : memref<2x32x96xbf16, #tpu.memory_space<vmem>>, vector<1x32x96xbf16>
    %196 = vector.shape_cast %195 : vector<1x32x96xbf16> to vector<32x96xbf16>
    %cst_72 = arith.constant dense<0.000000e+00> : vector<16x96xf32>
    %197 = tpu.matmul %194, %196, %cst_72 {dimension_numbers = #tpu.dot_dimension_numbers<[1], [0], [0], [1], [0, 0, 1, 1], [], []>} : vector<16x32xbf16>, vector<32x96xbf16>, vector<16x96xf32> -> vector<16x96xf32>
    %c1_73 = arith.constant 1 : index
    %c0_74 = arith.constant 0 : index
    %c0_75 = arith.constant 0 : index
    %198 = vector.load %arg3[%c1_73, %c0_74, %c0_75] : memref<2x1x96xf32, #tpu.memory_space<vmem>>, vector<1x1x96xf32>
    %199 = vector.shape_cast %198 : vector<1x1x96xf32> to vector<1x96xf32>
    %200 = vector.broadcast %199 : vector<1x96xf32> to vector<16x96xf32>
    %201 = arith.addf %197, %200 : vector<16x96xf32>
    %202 = vector.extract_strided_slice %201 {offsets = [0, 0], sizes = [16, 32], strides = [1, 1]} : vector<16x96xf32> to vector<16x32xf32>
    %203 = vector.extract_strided_slice %202 {offsets = [0, 0], sizes = [16, 8], strides = [1, 1]} : vector<16x32xf32> to vector<16x8xf32>
    %204 = vector.shape_cast %203 : vector<16x8xf32> to vector<2x8x8xf32>
    %205 = vector.extract_strided_slice %202 {offsets = [0, 8], sizes = [16, 8], strides = [1, 1]} : vector<16x32xf32> to vector<16x8xf32>
    %206 = vector.shape_cast %205 : vector<16x8xf32> to vector<2x8x8xf32>
    %207 = vector.extract_strided_slice %202 {offsets = [0, 16], sizes = [16, 8], strides = [1, 1]} : vector<16x32xf32> to vector<16x8xf32>
    %208 = vector.shape_cast %207 : vector<16x8xf32> to vector<2x8x8xf32>
    %209 = vector.extract_strided_slice %202 {offsets = [0, 24], sizes = [16, 8], strides = [1, 1]} : vector<16x32xf32> to vector<16x8xf32>
    %210 = vector.shape_cast %209 : vector<16x8xf32> to vector<2x8x8xf32>
    %211 = vector.shape_cast %204 : vector<2x8x8xf32> to vector<1x2x8x8xf32>
    %212 = vector.shape_cast %206 : vector<2x8x8xf32> to vector<1x2x8x8xf32>
    %213 = vector.shape_cast %208 : vector<2x8x8xf32> to vector<1x2x8x8xf32>
    %214 = vector.shape_cast %210 : vector<2x8x8xf32> to vector<1x2x8x8xf32>
    %215 = tpu.concatenate %211, %212, %213, %214 in 0 : vector<1x2x8x8xf32>, vector<1x2x8x8xf32>, vector<1x2x8x8xf32>, vector<1x2x8x8xf32> -> vector<4x2x8x8xf32>
    %216 = vector.shape_cast %215 : vector<4x2x8x8xf32> to vector<8x8x8xf32>
    %217 = vector.extract_strided_slice %201 {offsets = [0, 32], sizes = [16, 32], strides = [1, 1]} : vector<16x96xf32> to vector<16x32xf32>
    %218 = vector.extract_strided_slice %217 {offsets = [0, 0], sizes = [16, 8], strides = [1, 1]} : vector<16x32xf32> to vector<16x8xf32>
    %219 = vector.shape_cast %218 : vector<16x8xf32> to vector<2x8x8xf32>
    %220 = vector.extract_strided_slice %217 {offsets = [0, 8], sizes = [16, 8], strides = [1, 1]} : vector<16x32xf32> to vector<16x8xf32>
    %221 = vector.shape_cast %220 : vector<16x8xf32> to vector<2x8x8xf32>
    %222 = vector.extract_strided_slice %217 {offsets = [0, 16], sizes = [16, 8], strides = [1, 1]} : vector<16x32xf32> to vector<16x8xf32>
    %223 = vector.shape_cast %222 : vector<16x8xf32> to vector<2x8x8xf32>
    %224 = vector.extract_strided_slice %217 {offsets = [0, 24], sizes = [16, 8], strides = [1, 1]} : vector<16x32xf32> to vector<16x8xf32>
    %225 = vector.shape_cast %224 : vector<16x8xf32> to vector<2x8x8xf32>
    %226 = vector.shape_cast %219 : vector<2x8x8xf32> to vector<1x2x8x8xf32>
    %227 = vector.shape_cast %221 : vector<2x8x8xf32> to vector<1x2x8x8xf32>
    %228 = vector.shape_cast %223 : vector<2x8x8xf32> to vector<1x2x8x8xf32>
    %229 = vector.shape_cast %225 : vector<2x8x8xf32> to vector<1x2x8x8xf32>
    %230 = tpu.concatenate %226, %227, %228, %229 in 0 : vector<1x2x8x8xf32>, vector<1x2x8x8xf32>, vector<1x2x8x8xf32>, vector<1x2x8x8xf32> -> vector<4x2x8x8xf32>
    %231 = vector.shape_cast %230 : vector<4x2x8x8xf32> to vector<8x8x8xf32>
    %232 = vector.extract_strided_slice %201 {offsets = [0, 64], sizes = [16, 32], strides = [1, 1]} : vector<16x96xf32> to vector<16x32xf32>
    %233 = vector.extract_strided_slice %232 {offsets = [0, 0], sizes = [16, 8], strides = [1, 1]} : vector<16x32xf32> to vector<16x8xf32>
    %234 = vector.shape_cast %233 : vector<16x8xf32> to vector<2x8x8xf32>
    %235 = vector.extract_strided_slice %232 {offsets = [0, 8], sizes = [16, 8], strides = [1, 1]} : vector<16x32xf32> to vector<16x8xf32>
    %236 = vector.shape_cast %235 : vector<16x8xf32> to vector<2x8x8xf32>
    %237 = vector.extract_strided_slice %232 {offsets = [0, 16], sizes = [16, 8], strides = [1, 1]} : vector<16x32xf32> to vector<16x8xf32>
    %238 = vector.shape_cast %237 : vector<16x8xf32> to vector<2x8x8xf32>
    %239 = vector.extract_strided_slice %232 {offsets = [0, 24], sizes = [16, 8], strides = [1, 1]} : vector<16x32xf32> to vector<16x8xf32>
    %240 = vector.shape_cast %239 : vector<16x8xf32> to vector<2x8x8xf32>
    %241 = vector.shape_cast %234 : vector<2x8x8xf32> to vector<1x2x8x8xf32>
    %242 = vector.shape_cast %236 : vector<2x8x8xf32> to vector<1x2x8x8xf32>
    %243 = vector.shape_cast %238 : vector<2x8x8xf32> to vector<1x2x8x8xf32>
    %244 = vector.shape_cast %240 : vector<2x8x8xf32> to vector<1x2x8x8xf32>
    %245 = tpu.concatenate %241, %242, %243, %244 in 0 : vector<1x2x8x8xf32>, vector<1x2x8x8xf32>, vector<1x2x8x8xf32>, vector<1x2x8x8xf32> -> vector<4x2x8x8xf32>
    %246 = vector.shape_cast %245 : vector<4x2x8x8xf32> to vector<8x8x8xf32>
    "tpu.trace_start"() <{level = 10 : i32, message = "nqd,nkd->nqk"}> : () -> ()
    %cst_76 = arith.constant dense<0.000000e+00> : vector<8x8x8xf32>
    %247 = tpu.matmul %216, %231, %cst_76 {dimension_numbers = #tpu.dot_dimension_numbers<[2], [2], [1], [1], [0, 0, 0, 1, 1, 1], [0], [0]>} : vector<8x8x8xf32>, vector<8x8x8xf32>, vector<8x8x8xf32> -> vector<8x8x8xf32>
    "tpu.trace_stop"() : () -> ()
    %248 = vector.broadcast %25 : vector<8x1x8xf32> to vector<8x8x8xf32>
    %249 = arith.addf %247, %248 : vector<8x8x8xf32>
    %cst_77 = arith.constant dense<0xFF800000> : vector<8x8xf32>
    %250 = vector.multi_reduction <maximumf>, %249, %cst_77 [2] : vector<8x8x8xf32> to vector<8x8xf32>
    %251 = vector.shape_cast %250 : vector<8x8xf32> to vector<8x8x1xf32>
    %252 = vector.broadcast %251 : vector<8x8x1xf32> to vector<8x8x8xf32>
    %253 = arith.subf %249, %252 : vector<8x8x8xf32>
    %254 = math.exp %253 : vector<8x8x8xf32>
    %cst_78 = arith.constant dense<0.000000e+00> : vector<8x8xf32>
    %255 = vector.multi_reduction <add>, %254, %cst_78 [2] : vector<8x8x8xf32> to vector<8x8xf32>
    %256 = vector.shape_cast %255 : vector<8x8xf32> to vector<8x8x1xf32>
    %257 = tpu.reciprocal %256 {approx = true} : vector<8x8x1xf32> -> vector<8x8x1xf32>
    %258 = vector.broadcast %257 : vector<8x8x1xf32> to vector<8x8x8xf32>
    %259 = arith.mulf %254, %258 : vector<8x8x8xf32>
    "tpu.trace_start"() <{level = 10 : i32, message = "nqk,nkd->nqd"}> : () -> ()
    %cst_79 = arith.constant dense<0.000000e+00> : vector<8x8x8xf32>
    %260 = tpu.matmul %259, %246, %cst_79 {dimension_numbers = #tpu.dot_dimension_numbers<[2], [1], [1], [2], [0, 0, 0, 1, 1, 2], [0], [0]>} : vector<8x8x8xf32>, vector<8x8x8xf32>, vector<8x8x8xf32> -> vector<8x8x8xf32>
    "tpu.trace_stop"() : () -> ()
    %261 = vector.shape_cast %260 : vector<8x8x8xf32> to vector<4x16x8xf32>
    %262 = vector.extract_strided_slice %261 {offsets = [0, 0, 0], sizes = [1, 16, 8], strides = [1, 1, 1]} : vector<4x16x8xf32> to vector<1x16x8xf32>
    %263 = vector.shape_cast %262 : vector<1x16x8xf32> to vector<16x8xf32>
    %264 = vector.extract_strided_slice %261 {offsets = [1, 0, 0], sizes = [1, 16, 8], strides = [1, 1, 1]} : vector<4x16x8xf32> to vector<1x16x8xf32>
    %265 = vector.shape_cast %264 : vector<1x16x8xf32> to vector<16x8xf32>
    %266 = vector.extract_strided_slice %261 {offsets = [2, 0, 0], sizes = [1, 16, 8], strides = [1, 1, 1]} : vector<4x16x8xf32> to vector<1x16x8xf32>
    %267 = vector.shape_cast %266 : vector<1x16x8xf32> to vector<16x8xf32>
    %268 = vector.extract_strided_slice %261 {offsets = [3, 0, 0], sizes = [1, 16, 8], strides = [1, 1, 1]} : vector<4x16x8xf32> to vector<1x16x8xf32>
    %269 = vector.shape_cast %268 : vector<1x16x8xf32> to vector<16x8xf32>
    %270 = tpu.concatenate %263, %265, %267, %269 in 1 : vector<16x8xf32>, vector<16x8xf32>, vector<16x8xf32>, vector<16x8xf32> -> vector<16x32xf32>
    %271 = arith.truncf %270 : vector<16x32xf32> to vector<16x32xbf16>
    %c1_80 = arith.constant 1 : index
    %c0_81 = arith.constant 0 : index
    %c0_82 = arith.constant 0 : index
    %272 = vector.load %arg4[%c1_80, %c0_81, %c0_82] : memref<2x32x32xbf16, #tpu.memory_space<vmem>>, vector<1x32x32xbf16>
    %273 = vector.shape_cast %272 : vector<1x32x32xbf16> to vector<32x32xbf16>
    %cst_83 = arith.constant dense<0.000000e+00> : vector<16x32xf32>
    %274 = tpu.matmul %271, %273, %cst_83 {dimension_numbers = #tpu.dot_dimension_numbers<[1], [0], [0], [1], [0, 0, 1, 1], [], []>} : vector<16x32xbf16>, vector<32x32xbf16>, vector<16x32xf32> -> vector<16x32xf32>
    %c1_84 = arith.constant 1 : index
    %c0_85 = arith.constant 0 : index
    %c0_86 = arith.constant 0 : index
    %275 = vector.load %arg5[%c1_84, %c0_85, %c0_86] : memref<2x1x32xf32, #tpu.memory_space<vmem>>, vector<1x1x32xf32>
    %276 = vector.shape_cast %275 : vector<1x1x32xf32> to vector<1x32xf32>
    %277 = vector.broadcast %276 : vector<1x32xf32> to vector<16x32xf32>
    %278 = arith.addf %274, %277 : vector<16x32xf32>
    %279 = arith.addf %193, %278 : vector<16x32xf32>
    %c1_87 = arith.constant 1 : index
    %c0_88 = arith.constant 0 : index
    %c0_89 = arith.constant 0 : index
    %280 = vector.load %arg6[%c1_87, %c0_88, %c0_89] : memref<2x1x32xf32, #tpu.memory_space<vmem>>, vector<1x1x32xf32>
    %281 = vector.shape_cast %280 : vector<1x1x32xf32> to vector<1x32xf32>
    %c1_90 = arith.constant 1 : index
    %c0_91 = arith.constant 0 : index
    %c0_92 = arith.constant 0 : index
    %282 = vector.load %arg7[%c1_90, %c0_91, %c0_92] : memref<2x1x32xf32, #tpu.memory_space<vmem>>, vector<1x1x32xf32>
    %283 = vector.shape_cast %282 : vector<1x1x32xf32> to vector<1x32xf32>
    %cst_93 = arith.constant dense<0.000000e+00> : vector<16xf32>
    %284 = vector.multi_reduction <add>, %279, %cst_93 [1] : vector<16x32xf32> to vector<16xf32>
    %285 = vector.shape_cast %284 : vector<16xf32> to vector<16x1xf32>
    %cst_94 = arith.constant 3.200000e+01 : f32
    %286 = vector.broadcast %cst_94 : f32 to vector<16x1xf32>
    %287 = arith.divf %285, %286 : vector<16x1xf32>
    %288 = arith.mulf %279, %279 : vector<16x32xf32>
    %cst_95 = arith.constant dense<0.000000e+00> : vector<16xf32>
    %289 = vector.multi_reduction <add>, %288, %cst_95 [1] : vector<16x32xf32> to vector<16xf32>
    %290 = vector.shape_cast %289 : vector<16xf32> to vector<16x1xf32>
    %cst_96 = arith.constant 3.200000e+01 : f32
    %291 = vector.broadcast %cst_96 : f32 to vector<16x1xf32>
    %292 = arith.divf %290, %291 : vector<16x1xf32>
    %293 = arith.mulf %287, %287 : vector<16x1xf32>
    %294 = arith.subf %292, %293 : vector<16x1xf32>
    %cst_97 = arith.constant 9.99999996E-13 : f32
    %295 = vector.broadcast %cst_97 : f32 to vector<16x1xf32>
    %296 = arith.addf %294, %295 : vector<16x1xf32>
    %297 = math.rsqrt %296 : vector<16x1xf32>
    %298 = vector.broadcast %287 : vector<16x1xf32> to vector<16x32xf32>
    %299 = arith.subf %279, %298 : vector<16x32xf32>
    %300 = vector.broadcast %297 : vector<16x1xf32> to vector<16x32xf32>
    %301 = arith.mulf %299, %300 : vector<16x32xf32>
    %302 = vector.broadcast %281 : vector<1x32xf32> to vector<16x32xf32>
    %303 = arith.mulf %301, %302 : vector<16x32xf32>
    %304 = vector.broadcast %283 : vector<1x32xf32> to vector<16x32xf32>
    %305 = arith.addf %303, %304 : vector<16x32xf32>
    %306 = arith.truncf %305 : vector<16x32xf32> to vector<16x32xbf16>
    %c1_98 = arith.constant 1 : index
    %c0_99 = arith.constant 0 : index
    %c0_100 = arith.constant 0 : index
    %307 = vector.load %arg8[%c1_98, %c0_99, %c0_100] : memref<2x32x64xbf16, #tpu.memory_space<vmem>>, vector<1x32x64xbf16>
    %308 = vector.shape_cast %307 : vector<1x32x64xbf16> to vector<32x64xbf16>
    %cst_101 = arith.constant dense<0.000000e+00> : vector<16x64xf32>
    %309 = tpu.matmul %306, %308, %cst_101 {dimension_numbers = #tpu.dot_dimension_numbers<[1], [0], [0], [1], [0, 0, 1, 1], [], []>} : vector<16x32xbf16>, vector<32x64xbf16>, vector<16x64xf32> -> vector<16x64xf32>
    %c1_102 = arith.constant 1 : index
    %c0_103 = arith.constant 0 : index
    %c0_104 = arith.constant 0 : index
    %310 = vector.load %arg9[%c1_102, %c0_103, %c0_104] : memref<2x1x64xf32, #tpu.memory_space<vmem>>, vector<1x1x64xf32>
    %311 = vector.shape_cast %310 : vector<1x1x64xf32> to vector<1x64xf32>
    %312 = vector.broadcast %311 : vector<1x64xf32> to vector<16x64xf32>
    %313 = arith.addf %309, %312 : vector<16x64xf32>
    %cst_105 = arith.constant 5.000000e-01 : f32
    %314 = vector.broadcast %cst_105 : f32 to vector<16x64xf32>
    %315 = arith.mulf %314, %313 : vector<16x64xf32>
    %cst_106 = arith.constant 4.471500e-02 : f32
    %316 = vector.broadcast %cst_106 : f32 to vector<16x64xf32>
    %317 = arith.mulf %316, %313 : vector<16x64xf32>
    %318 = arith.mulf %317, %313 : vector<16x64xf32>
    %319 = arith.mulf %318, %313 : vector<16x64xf32>
    %320 = arith.addf %313, %319 : vector<16x64xf32>
    %cst_107 = arith.constant 0.797884583 : f32
    %321 = vector.broadcast %cst_107 : f32 to vector<16x64xf32>
    %322 = arith.mulf %321, %320 : vector<16x64xf32>
    %323 = math.tanh %322 : vector<16x64xf32>
    %cst_108 = arith.constant 1.000000e+00 : f32
    %324 = vector.broadcast %cst_108 : f32 to vector<16x64xf32>
    %325 = arith.addf %324, %323 : vector<16x64xf32>
    %326 = arith.mulf %315, %325 : vector<16x64xf32>
    %327 = arith.truncf %326 : vector<16x64xf32> to vector<16x64xbf16>
    %c1_109 = arith.constant 1 : index
    %c0_110 = arith.constant 0 : index
    %c0_111 = arith.constant 0 : index
    %328 = vector.load %arg10[%c1_109, %c0_110, %c0_111] : memref<2x64x32xbf16, #tpu.memory_space<vmem>>, vector<1x64x32xbf16>
    %329 = vector.shape_cast %328 : vector<1x64x32xbf16> to vector<64x32xbf16>
    %cst_112 = arith.constant dense<0.000000e+00> : vector<16x32xf32>
    %330 = tpu.matmul %327, %329, %cst_112 {dimension_numbers = #tpu.dot_dimension_numbers<[1], [0], [0], [1], [0, 0, 1, 1], [], []>} : vector<16x64xbf16>, vector<64x32xbf16>, vector<16x32xf32> -> vector<16x32xf32>
    %c1_113 = arith.constant 1 : index
    %c0_114 = arith.constant 0 : index
    %c0_115 = arith.constant 0 : index
    %331 = vector.load %arg11[%c1_113, %c0_114, %c0_115] : memref<2x1x32xf32, #tpu.memory_space<vmem>>, vector<1x1x32xf32>
    %332 = vector.shape_cast %331 : vector<1x1x32xf32> to vector<1x32xf32>
    %333 = vector.broadcast %332 : vector<1x32xf32> to vector<16x32xf32>
    %334 = arith.addf %330, %333 : vector<16x32xf32>
    %335 = arith.addf %305, %334 : vector<16x32xf32>
    %c1_116 = arith.constant 1 : index
    %c0_117 = arith.constant 0 : index
    %c0_118 = arith.constant 0 : index
    %336 = vector.load %arg12[%c1_116, %c0_117, %c0_118] : memref<2x1x32xf32, #tpu.memory_space<vmem>>, vector<1x1x32xf32>
    %337 = vector.shape_cast %336 : vector<1x1x32xf32> to vector<1x32xf32>
    %c1_119 = arith.constant 1 : index
    %c0_120 = arith.constant 0 : index
    %c0_121 = arith.constant 0 : index
    %338 = vector.load %arg13[%c1_119, %c0_120, %c0_121] : memref<2x1x32xf32, #tpu.memory_space<vmem>>, vector<1x1x32xf32>
    %339 = vector.shape_cast %338 : vector<1x1x32xf32> to vector<1x32xf32>
    %cst_122 = arith.constant dense<0.000000e+00> : vector<16xf32>
    %340 = vector.multi_reduction <add>, %335, %cst_122 [1] : vector<16x32xf32> to vector<16xf32>
    %341 = vector.shape_cast %340 : vector<16xf32> to vector<16x1xf32>
    %cst_123 = arith.constant 3.200000e+01 : f32
    %342 = vector.broadcast %cst_123 : f32 to vector<16x1xf32>
    %343 = arith.divf %341, %342 : vector<16x1xf32>
    %344 = arith.mulf %335, %335 : vector<16x32xf32>
    %cst_124 = arith.constant dense<0.000000e+00> : vector<16xf32>
    %345 = vector.multi_reduction <add>, %344, %cst_124 [1] : vector<16x32xf32> to vector<16xf32>
    %346 = vector.shape_cast %345 : vector<16xf32> to vector<16x1xf32>
    %cst_125 = arith.constant 3.200000e+01 : f32
    %347 = vector.broadcast %cst_125 : f32 to vector<16x1xf32>
    %348 = arith.divf %346, %347 : vector<16x1xf32>
    %349 = arith.mulf %343, %343 : vector<16x1xf32>
    %350 = arith.subf %348, %349 : vector<16x1xf32>
    %cst_126 = arith.constant 9.99999996E-13 : f32
    %351 = vector.broadcast %cst_126 : f32 to vector<16x1xf32>
    %352 = arith.addf %350, %351 : vector<16x1xf32>
    %353 = math.rsqrt %352 : vector<16x1xf32>
    %354 = vector.broadcast %343 : vector<16x1xf32> to vector<16x32xf32>
    %355 = arith.subf %335, %354 : vector<16x32xf32>
    %356 = vector.broadcast %353 : vector<16x1xf32> to vector<16x32xf32>
    %357 = arith.mulf %355, %356 : vector<16x32xf32>
    %358 = vector.broadcast %337 : vector<1x32xf32> to vector<16x32xf32>
    %359 = arith.mulf %357, %358 : vector<16x32xf32>
    %360 = vector.broadcast %339 : vector<1x32xf32> to vector<16x32xf32>
    %361 = arith.addf %359, %360 : vector<16x32xf32>
    %362 = vector.shape_cast %361 : vector<16x32xf32> to vector<2x8x32xf32>
    %363 = vector.extract_strided_slice %362 {offsets = [0, 0, 0], sizes = [2, 1, 32], strides = [1, 1, 1]} : vector<2x8x32xf32> to vector<2x1x32xf32>
    %364 = vector.shape_cast %363 : vector<2x1x32xf32> to vector<2x32xf32>
    %365 = arith.truncf %364 : vector<2x32xf32> to vector<2x32xbf16>
    %c0_127 = arith.constant 0 : index
    %c0_128 = arith.constant 0 : index
    %366 = vector.load %arg16[%c0_127, %c0_128] : memref<32x256xbf16, #tpu.memory_space<vmem>>, vector<32x256xbf16>
    %cst_129 = arith.constant dense<0.000000e+00> : vector<2x256xf32>
    %367 = tpu.matmul %365, %366, %cst_129 {dimension_numbers = #tpu.dot_dimension_numbers<[1], [0], [0], [1], [0, 0, 1, 1], [], []>} : vector<2x32xbf16>, vector<32x256xbf16>, vector<2x256xf32> -> vector<2x256xf32>
    %c0_130 = arith.constant 0 : index
    %c0_131 = arith.constant 0 : index
    %368 = vector.load %arg17[%c0_130, %c0_131] : memref<1x256xf32, #tpu.memory_space<vmem>>, vector<1x256xf32>
    %369 = vector.broadcast %368 : vector<1x256xf32> to vector<2x256xf32>
    %370 = arith.addf %367, %369 : vector<2x256xf32>
    %c0_132 = arith.constant 0 : index
    %c0_133 = arith.constant 0 : index
    %371 = vector.load %arg18[%c0_132, %c0_133] : memref<1x256xf32, #tpu.memory_space<vmem>>, vector<1x256xf32>
    %c0_134 = arith.constant 0 : index
    %c0_135 = arith.constant 0 : index
    %372 = vector.load %arg19[%c0_134, %c0_135] : memref<1x256xf32, #tpu.memory_space<vmem>>, vector<1x256xf32>
    %cst_136 = arith.constant dense<0.000000e+00> : vector<2xf32>
    %373 = vector.multi_reduction <add>, %370, %cst_136 [1] : vector<2x256xf32> to vector<2xf32>
    %374 = vector.shape_cast %373 : vector<2xf32> to vector<2x1xf32>
    %cst_137 = arith.constant 2.560000e+02 : f32
    %375 = vector.broadcast %cst_137 : f32 to vector<2x1xf32>
    %376 = arith.divf %374, %375 : vector<2x1xf32>
    %377 = arith.mulf %370, %370 : vector<2x256xf32>
    %cst_138 = arith.constant dense<0.000000e+00> : vector<2xf32>
    %378 = vector.multi_reduction <add>, %377, %cst_138 [1] : vector<2x256xf32> to vector<2xf32>
    %379 = vector.shape_cast %378 : vector<2xf32> to vector<2x1xf32>
    %cst_139 = arith.constant 2.560000e+02 : f32
    %380 = vector.broadcast %cst_139 : f32 to vector<2x1xf32>
    %381 = arith.divf %379, %380 : vector<2x1xf32>
    %382 = arith.mulf %376, %376 : vector<2x1xf32>
    %383 = arith.subf %381, %382 : vector<2x1xf32>
    %cst_140 = arith.constant 9.99999974E-6 : f32
    %384 = vector.broadcast %cst_140 : f32 to vector<2x1xf32>
    %385 = arith.addf %383, %384 : vector<2x1xf32>
    %386 = math.rsqrt %385 : vector<2x1xf32>
    %387 = vector.broadcast %376 : vector<2x1xf32> to vector<2x256xf32>
    %388 = arith.subf %370, %387 : vector<2x256xf32>
    %389 = vector.broadcast %386 : vector<2x1xf32> to vector<2x256xf32>
    %390 = arith.mulf %388, %389 : vector<2x256xf32>
    %391 = vector.broadcast %371 : vector<1x256xf32> to vector<2x256xf32>
    %392 = arith.mulf %390, %391 : vector<2x256xf32>
    %393 = vector.broadcast %372 : vector<1x256xf32> to vector<2x256xf32>
    %394 = arith.addf %392, %393 : vector<2x256xf32>
    %c0_141 = arith.constant 0 : index
    %c0_142 = arith.constant 0 : index
    %395 = vector.load %arg20[%c0_141, %c0_142] : memref<2x256xf32, #tpu.memory_space<vmem>>, vector<2x256xf32>
    tpu.vector_store %arg20[%c0_141, %c0_142], %394 {strides = array<i32>} : memref<2x256xf32, #tpu.memory_space<vmem>>, vector<2x256xf32>,
    return
  }
}

</mosaic_0001>

<bundles_post_ra>
// kernel: indobert_text_encoder_forward.1
= control target key start
LH: loop header
LB: loop body
LE: loop exit
PB: predicated region body
PF: predicated region fallthrough
CT: control target
= control target key end

     0   :  { %s5282_s0 = inlined_call_operand.vmem [shape: f32[16,32], index: 0, kind: input, shape index: {}]   ;;  %s5283_s1 = inlined_call_operand.vmem [shape: f32[8,1,8], index: 1, kind: input, shape index: {}]   ;;  %s5284_s2 = inlined_call_operand.vmem [shape: bf16[2,32,96], index: 2, kind: input, shape index: {}]   ;;  %s5285_s3 = inlined_call_operand.vmem [shape: f32[2,1,96], index: 3, kind: input, shape index: {}]   ;;  %s5286_s4 = inlined_call_operand.vmem [shape: bf16[2,32,32], index: 4, kind: input, shape index: {}]   ;;  %s5287_s5 = inlined_call_operand.vmem [shape: f32[2,1,32], index: 5, kind: input, shape index: {}]   ;;  %s5288_s6 = inlined_call_operand.vmem [shape: f32[2,1,32], index: 6, kind: input, shape index: {}]   ;;  %s5289_s7 = inlined_call_operand.vmem [shape: f32[2,1,32], index: 7, kind: input, shape index: {}]   ;;  %s5290_s8 = inlined_call_operand.vmem [shape: bf16[2,32,64], index: 8, kind: input, shape index: {}]   ;;  %s5291_s9 = inlined_call_operand.vmem [shape: f32[2,1,64], index: 9, kind: input, shape index: {}]   ;;  %s5292_s10 = inlined_call_operand.vmem [shape: bf16[2,64,32], index: 10, kind: input, shape index: {}]   ;;  %s5293_s11 = inlined_call_operand.vmem [shape: f32[2,1,32], index: 11, kind: input, shape index: {}]   ;;  %s5294_s12 = inlined_call_operand.vmem [shape: f32[2,1,32], index: 12, kind: input, shape index: {}]   ;;  %s5295_s13 = inlined_call_operand.vmem [shape: f32[2,1,32], index: 13, kind: input, shape index: {}]   ;;  %s5296_s14 = inlined_call_operand.vmem [shape: f32[1,32], index: 14, kind: input, shape index: {}]   ;;  %s5297_s15 = inlined_call_operand.vmem [shape: f32[1,32], index: 15, kind: input, shape index: {}]   ;;  %s5298_s16 = inlined_call_operand.vmem [shape: bf16[32,256], index: 16, kind: input, shape index: {}]   ;;  %s5299_s17 = inlined_call_operand.vmem [shape: f32[1,256], index: 17, kind: input, shape index: {}]   ;;  %s5300_s18 = inlined_call_operand.vmem [shape: f32[1,256], index: 18, kind: input, shape index: {}]   ;;  %s5301_s19 = inlined_call_operand.vmem [shape: f32[1,256], index: 19, kind: input, shape index: {}]   ;;  %s5302_s20 = inlined_call_operand.hbm [shape: f32[2,256], index: 20, kind: output, shape index: {}]  }
   0x1   :  { %5310 = sst [smem:[#allocation5_spill]] %s5282_s0 }
   0x2   :  { %5311 = sst [smem:[#allocation6_spill]] %s5283_s1 }
   0x3   :  { %5312 = sst [smem:[#allocation7_spill]] %s5284_s2 }
   0x4   :  { %5313 = sst [smem:[#allocation8_spill]] %s5285_s3 }
   0x5   :  { %5314 = sst [smem:[#allocation9_spill]] %s5286_s4 }
   0x6   :  { %s5315_s23 = sld [smem:[#allocation5_spill]]  ;;  %vm71_vm0 = vcmask 261120  }
   0xc   :  { %v67_v0 = vld [vmem:[%s5315_s23] sm:$0xff]  ;;  %v68_v1 = vld [vmem:[%s5315_s23 + $0x8] sm:$0xff] }
   0xd   :  { %v72_v2 = vsel %vm71_vm0, %v67_v0, 0.0  ;;  %v81_v3 = vmul.f32 %v67_v0, %v67_v0  ;;  %v75_v4 = vsel %vm71_vm0, %v68_v1, 0.0  ;;  %v82_v5 = vmul.f32 %v68_v1, %v68_v1 }
   0xe   :  { %73 = vadd.xlane.f32.xlu0 %v72_v2 }
   0xf   :  { %v83_v6 = vsel %vm71_vm0, %v81_v3, 0.0  ;;  %v86_v7 = vsel %vm71_vm0, %v82_v5, 0.0 }
  0x10   :  { %84 = vadd.xlane.f32.xlu1 %v83_v6 }
  0x12   :  { %76 = vadd.xlane.f32.xlu0 %v75_v4 }
  0x14   :  { %87 = vadd.xlane.f32.xlu1 %v86_v7 }
  0x15   :  { %25 = vsyncpa [#allocation3], 0  ;;  %s5316_s26 = sld [smem:[#allocation7_spill]]  ;;  %v4513_v9 = vmov 0.0   ;;  %vm4514_vm1 = vmmov 0   ;;  %s5317_s1 = sld [smem:[#allocation8_spill]] }
  0x16   :  { %4095 = vmatprep.subr.bf16.mxu0 %v4513_v9  ;;  %4099 = vmatprep.mubr.msk.bf16.mxu0 %vm4514_vm1, %v4513_v9  ;;  %v3867_v28 = vld [vmem:[%s5296_s14] ss:$0 sm:$0xff]  ;;  %s4516_s22 = smov 120   ;;  %s4517_s23 = smov 104   ;;  %vm259_vm2 = vcmask 64512   ;;  %vm1588_vm3 = vcmask 130048  }
  0x17   :  { %4103 = vmatprep.subr.mxu1 %v4513_v9  ;;  %4105 = vmatprep.mubr.msk.f32.mxu1 %vm4514_vm1, %v4513_v9  ;;  %v3868_v33 = vld [vmem:[%s5297_s15] ss:$0 sm:$0xff]  ;;  %s4515_s15 = smov 112   ;;  %s4518_s24 = smov 96   ;;  %vm1591_vm4 = vcmask 195584   ;;  %vm1838_vm5 = vcmask 523264  }
  0x18   :  { %s5318_s3 = sld [smem:[#allocation6_spill]]  ;;  %s4519_s30 = smov 64   ;;  %vm3722_vm6 = vcmask 1041409   ;;  %vm3791_vm7 = vcmask 1041408  }
  0x19   :  { %s5319_s14 = sld [smem:[#allocation9_spill]]  ;;  %s4520_s25 = smov 8  }
  0x1a   :  { %s5309_s27 = smov 16   ;;  %s5308_s28 = smov 24  }
  0x1b   :  { %v4369_v8 = vld [vmem:[%s5316_s26] sm:$0xff]   ;;  %v4370_v10 = vld [vmem:[%s5316_s26 + $0x8] sm:$0xff]  }
  0x1c   :  { %4096 = vmatpush3.bf16.msra.mxu0 %v4369_v8  ;;  %v3869_v38 = vld [vmem:[%s5317_s1] ss:$0 sm:$0xff] }
  0x1d   :  { %4097 = vmatprep.subr.bf16.mxu0 %v4513_v9 }
  0x1e   :  { %v4767_v59 = vld [vmem:[%s5318_s3] ss:$0 sm:$0xff]  ;;  %v4781_v5 = vld [vmem:[%s5318_s3 + $0x2] ss:$0 sm:$0xff] }
  0x20   :  { %4098 = vmatpush3.bf16.msra.mxu0 %v4370_v10  ;;  %v4787_v10 = vld [vmem:[%s5318_s3 + $0x3] ss:$0 sm:$0xff] }
  0x21   :  { %4118 = vmatprep.subr.mxu0 %v4513_v9 }
  0x9b   :  { %v74_v11 = vpop.xlane.xlu0 %73 }
  0x9c   :  { %v79_v12 = vmul.f32 0.03125, %v74_v11 }
  0x9d   :  { %v85_v13 = vpop.xlane.xlu1 %84 }
  0x9e   :  { %v91_v14 = vmul.f32 %v79_v12, %v79_v12  ;;  %v89_v15 = vmul.f32 0.03125, %v85_v13  ;;  %v99_v25 = vsub.f32 %v67_v0, %v79_v12  ;;  %v4774_v0 = vld [vmem:[%s5318_s3 + $0x1] ss:$0 sm:$0xff]  ;;  %v4793_v13 = vld [vmem:[%s5318_s3 + $0x4] ss:$0 sm:$0xff] }
  0x9f   :  { %v77_v16 = vpop.xlane.xlu0 %76 }
  0xa0   :  { %v93_v17 = vsub.f32 %v89_v15, %v91_v14  ;;  %v80_v18 = vmul.f32 0.03125, %v77_v16 }
  0xa1   :  { %v88_v19 = vpop.xlane.xlu1 %87 }
  0xa2   :  { %v95_v20 = vadd.f32 1e-12, %v93_v17  ;;  %v92_v21 = vmul.f32 %v80_v18, %v80_v18  ;;  %v90_v22 = vmul.f32 0.03125, %v88_v19  ;;  %v100_v29 = vsub.f32 %v68_v1, %v80_v18 }
  0xa4   :  { %4395 = vrsqrt.f32 %v95_v20  ;;  %v94_v23 = vsub.f32 %v90_v22, %v92_v21  ;;  %v4801_v20 = vld [vmem:[%s5318_s3 + $0x5] ss:$0 sm:$0xff]  ;;  %v4806_v21 = vld [vmem:[%s5318_s3 + $0x6] ss:$0 sm:$0xff] }
  0xa6   :  { %v96_v24 = vadd.f32 1e-12, %v94_v23 }
  0xa8   :  { %4397 = vrsqrt.f32 %v96_v24 }
  0xae   :  { %v4396_v26 = vpop.eup %4395 }
  0xaf   :  { %v101_v27 = vmul.f32 %v4396_v26, %v99_v25 }
  0xb1   :  { %v109_v32 = vmul.f32 %v3867_v28, %v101_v27 }
  0xb2   :  { %v4398_v30 = vpop.eup %4397 }
  0xb3   :  { %v102_v31 = vmul.f32 %v4398_v30, %v100_v29  ;;  %v4660_v35 = vadd.f32 %v3868_v33, %v109_v32  ;;  %v4814_v29 = vld [vmem:[%s5318_s3 + $0x7] ss:$0 sm:$0xff] }
  0xb5   :  { %v110_v34 = vmul.f32 %v3867_v28, %v102_v31 }
  0xb7   :  { %v4662_v36 = vadd.f32 %v3868_v33, %v110_v34 }
  0xb9   :  { %v127_v37 = vpack.c.bf16 %v4662_v36, %v4660_v35 }
  0xbb   :  { %4100 = vmatmul.mubr.msk.bf16.vlgmr.msra.gmra.mrb[0].mxu0 %vm71_vm0, %v127_v37 }
  0xbc   :  { %4120 = vmatprep.mubr.msk.f32.mxu0 %vm4514_vm1, %v4513_v9 }
 0x18e   :  { %v188_v39 = vpop.f32.mrb[0].mxu0 }
 0x18f   :  { %v4672_v40 = vadd.f32 %v3869_v38, %v188_v39  ;;  %v4101_v41 = vpop.f32.mrb[1].mxu0 }
 0x190   :  { %v191_v42 = vpop.f32.mrb[2].mxu0 }
 0x191   :  { %201 = vrot.lane.b32.xlu1 %v4672_v40, %s4515_s15  ;;  %197 = vrot.lane.b32.xlu0 %v4672_v40, %s4516_s22  ;;  %v4102_v43 = vpop.f32.mrb[3].mxu0  ;;  %v4678_v44 = vadd.f32 %v3869_v38, %v191_v42 }
 0x195   :  { %205 = vrot.lane.b32.xlu0 %v4672_v40, %s4517_s23  ;;  %199 = vrot.lane.b32.xlu1 %v4678_v44, %s4516_s22 }
 0x199   :  { %257 = vrot.lane.b32.xlu0 %v4672_v40, %s4518_s24  ;;  %203 = vrot.lane.b32.xlu1 %v4678_v44, %s4515_s15 }
 0x19d   :  { %207 = vrot.lane.b32.xlu1 %v4678_v44, %s4517_s23 }
 0x1a1   :  { %334 = vrot.lane.b32.xlu1 %v4678_v44, %s4518_s24 }
 0x203   :  { %v4692_v45 = vpop.permute.xlu1 %201  ;;  %v4694_v46 = vpop.permute.xlu0 %197 }
 0x204   :  { %410 = vrot.lane.b32.xlu0 %v4694_v46, %s4518_s24 }
 0x207   :  { %v4698_v47 = vpop.permute.xlu0 %205  ;;  %v4700_v48 = vpop.permute.xlu1 %199 }
 0x208   :  { %562 = vrot.lane.b32.xlu0 %v4692_v45, %s4518_s24  ;;  %486 = vrot.lane.b32.xlu1 %v4700_v48, %s4518_s24 }
 0x20b   :  { %v258_v49 = vpop.permute.xlu0 %257  ;;  %v4706_v50 = vpop.permute.xlu1 %203 }
 0x20c   :  { %714 = vrot.lane.b32.xlu0 %v4698_v47, %s4518_s24  ;;  %4104 = vmatpush3.xpose.msk.msra.mxu1 %vm259_vm2, %v258_v49 }
 0x20d   :  { %638 = vrot.lane.b32.xlu1 %v4706_v50, %s4518_s24  ;;  %4108 = vmatprep.subr.mxu1 %v4513_v9 }
 0x20f   :  { %4106 = vmatmul.mubr.msk.f32.vlgmr.msra.gmra.mrb[0].mxu1 %vm259_vm2, %v4672_v40  ;;  %v4716_v51 = vpop.permute.xlu1 %207 }
 0x210   :  { %4110 = vmatprep.mubr.msk.f32.mxu1 %vm4514_vm1, %v4513_v9 }
 0x211   :  { %790 = vrot.lane.b32.xlu1 %v4716_v51, %s4518_s24 }
 0x213   :  { %v335_v52 = vpop.permute.xlu1 %334 }
 0x214   :  { %4109 = vmatpush3.xpose.msk.msra.mxu1 %vm259_vm2, %v335_v52 }
 0x215   :  { %4113 = vmatprep.subr.mxu1 %v4513_v9 }
 0x217   :  { %4111 = vmatmul.mubr.msk.f32.vlgmr.msra.gmra.mrb[2].mxu1 %vm259_vm2, %v4678_v44 }
 0x218   :  { %4115 = vmatprep.mubr.msk.f32.mxu1 %vm4514_vm1, %v4513_v9 }
 0x276   :  { %v411_v53 = vpop.permute.xlu0 %410 }
 0x277   :  { %4114 = vmatpush3.xpose.msk.msra.mxu1 %vm259_vm2, %v411_v53 }
 0x278   :  { %4123 = vmatprep.subr.mxu1 %v4513_v9 }
 0x27a   :  { %v563_v54 = vpop.permute.xlu0 %562  ;;  %4116 = vmatmul.mubr.msk.f32.vlgmr.msra.gmra.mrb[4].mxu1 %vm259_vm2, %v4694_v46  ;;  %v487_v55 = vpop.permute.xlu1 %486 }
 0x27b   :  { %4119 = vmatpush3.xpose.msk.msra.mxu0 %vm259_vm2, %v487_v55  ;;  %4124 = vmatpush3.xpose.msk.msra.mxu1 %vm259_vm2, %v563_v54 }
 0x27c   :  { %4125 = vmatprep.mubr.msk.f32.mxu1 %vm4514_vm1, %v4513_v9  ;;  %4128 = vmatprep.subr.mxu0 %v4513_v9 }
 0x27d   :  { %4133 = vmatprep.subr.mxu1 %v4513_v9 }
 0x27e   :  { %v715_v56 = vpop.permute.xlu0 %714  ;;  %4121 = vmatmul.mubr.msk.f32.vlgmr.msra.gmra.mrb[4].mxu0 %vm259_vm2, %v4700_v48  ;;  %4126 = vmatmul.mubr.msk.f32.vlgmr.msra.gmra.mrb[6].mxu1 %vm259_vm2, %v4692_v45 }
 0x27f   :  { %v639_v57 = vpop.permute.xlu1 %638  ;;  %4134 = vmatpush3.xpose.msk.msra.mxu1 %vm259_vm2, %v715_v56  ;;  %4130 = vmatprep.mubr.msk.f32.mxu0 %vm4514_vm1, %v4513_v9 }
 0x280   :  { %4129 = vmatpush3.xpose.msk.msra.mxu0 %vm259_vm2, %v639_v57  ;;  %4135 = vmatprep.mubr.msk.f32.mxu1 %vm4514_vm1, %v4513_v9 }
 0x281   :  { %4138 = vmatprep.subr.mxu0 %v4513_v9  ;;  %4143 = vmatprep.subr.mxu1 %v4513_v9 }
 0x282   :  { %4136 = vmatmul.mubr.msk.f32.vlgmr.msra.gmra.mrb[8].mxu1 %vm259_vm2, %v4698_v47 }
 0x283   :  { %4131 = vmatmul.mubr.msk.f32.vlgmr.msra.gmra.mrb[6].mxu0 %vm259_vm2, %v4706_v50  ;;  %v791_v58 = vpop.permute.xlu1 %790  ;;  %4145 = vmatprep.mubr.msk.f32.mxu1 %vm4514_vm1, %v4513_v9 }
 0x284   :  { %4139 = vmatpush3.xpose.msk.msra.mxu0 %vm259_vm2, %v791_v58  ;;  %4140 = vmatprep.mubr.msk.f32.mxu0 %vm4514_vm1, %v4513_v9 }
 0x285   :  { %4148 = vmatprep.subr.mxu0 %v4513_v9 }
 0x287   :  { %4141 = vmatmul.mubr.msk.f32.vlgmr.msra.gmra.mrb[8].mxu0 %vm259_vm2, %v4716_v51 }
 0x288   :  { %4150 = vmatprep.mubr.msk.f32.mxu0 %vm4514_vm1, %v4513_v9 }
 0x2e2   :  { %v330_v60 = vpop.f32.mrb[0].mxu1 }
 0x2e3   :  { %v331_v61 = vadd.f32 %v4767_v59, %v330_v60  ;;  %v4107_v62 = vpop.f32.mrb[1].mxu1 }
 0x2e5   :  { %v866_v63 = vsel %vm259_vm2, %v331_v61, -inf }
 0x2e6   :  { %867 = vmax.xlane.f32.xlu0 %v866_v63 }
 0x2ea   :  { %v406_v1 = vpop.f32.mrb[2].mxu1 }
 0x2eb   :  { %v407_v2 = vadd.f32 %v4774_v0, %v406_v1  ;;  %v4112_v3 = vpop.f32.mrb[3].mxu1 }
 0x2ed   :  { %v869_v4 = vsel %vm259_vm2, %v407_v2, -inf }
 0x2ee   :  { %870 = vmax.xlane.f32.xlu1 %v869_v4 }
 0x34d   :  { %v482_v6 = vpop.f32.mrb[4].mxu1 }
 0x34e   :  { %v483_v7 = vadd.f32 %v4781_v5, %v482_v6  ;;  %v4117_v8 = vpop.f32.mrb[5].mxu1 }
 0x350   :  { %v872_v11 = vsel %vm259_vm2, %v483_v7, -inf }
 0x351   :  { %873 = vmax.xlane.f32.xlu0 %v872_v11  ;;  %v558_v12 = vpop.f32.mrb[4].mxu0  ;;  %v634_v14 = vpop.f32.mrb[6].mxu1 }
 0x352   :  { %v559_v15 = vadd.f32 %v4787_v10, %v558_v12  ;;  %v4122_v16 = vpop.f32.mrb[5].mxu0  ;;  %v4127_v17 = vpop.f32.mrb[7].mxu1  ;;  %v635_v18 = vadd.f32 %v4793_v13, %v634_v14 }
 0x354   :  { %v875_v19 = vsel %vm259_vm2, %v559_v15, -inf  ;;  %v878_v28 = vsel %vm259_vm2, %v635_v18, -inf }
 0x355   :  { %v786_v22 = vpop.f32.mrb[8].mxu1  ;;  %876 = vmax.xlane.f32.xlu0 %v875_v19 }
 0x356   :  { %v710_v23 = vpop.f32.mrb[6].mxu0  ;;  %v4137_v24 = vpop.f32.mrb[9].mxu1  ;;  %v787_v27 = vadd.f32 %v4806_v21, %v786_v22 }
 0x357   :  { %v711_v25 = vadd.f32 %v4801_v20, %v710_v23  ;;  %v4132_v26 = vpop.f32.mrb[7].mxu0 }
 0x358   :  { %v884_v34 = vsel %vm259_vm2, %v787_v27, -inf }
 0x359   :  { %879 = vmax.xlane.f32.xlu0 %v878_v28  ;;  %v881_v30 = vsel %vm259_vm2, %v711_v25, -inf }
 0x35a   :  { %882 = vmax.xlane.f32.xlu1 %v881_v30  ;;  %v862_v31 = vpop.f32.mrb[8].mxu0 }
 0x35b   :  { %v863_v32 = vadd.f32 %v4814_v29, %v862_v31  ;;  %v4142_v33 = vpop.f32.mrb[9].mxu0 }
 0x35d   :  { %885 = vmax.xlane.f32.xlu0 %v884_v34  ;;  %v887_v37 = vsel %vm259_vm2, %v863_v32, -inf }
 0x35e   :  { %888 = vmax.xlane.f32.xlu1 %v887_v37 }
 0x36f   :  { %1030 = vrot.lane.b32.xlu1 %v4678_v44, %s4519_s30 }
 0x373   :  { %1106 = vrot.lane.b32.xlu1 %v4694_v46, %s4519_s30  ;;  %954 = vrot.lane.b32.xlu0 %v4672_v40, %s4519_s30  ;;  %v868_v38 = vpop.xlane.xlu0 %867 }
 0x374   :  { %v890_v39 = vsub.f32 %v331_v61, %v868_v38 }
 0x376   :  { %v898_v41 = vmul.f32 1.442695, %v890_v39 }
 0x377   :  { %1182 = vrot.lane.b32.xlu1 %v4700_v48, %s4519_s30  ;;  %1258 = vrot.lane.b32.xlu0 %v4692_v45, %s4519_s30 }
 0x378   :  { %4399 = vpow2.f32 %v898_v41 }
 0x37b   :  { %1334 = vrot.lane.b32.xlu1 %v4706_v50, %s4519_s30  ;;  %v871_v42 = vpop.xlane.xlu1 %870 }
 0x37c   :  { %v891_v43 = vsub.f32 %v407_v2, %v871_v42 }
 0x37e   :  { %v900_v44 = vmul.f32 1.442695, %v891_v43 }
 0x380   :  { %4401 = vpow2.f32 %v900_v44 }
 0x382   :  { %v4832_v46 = vpop.eup %4399 }
 0x383   :  { %v914_v40 = vsel %vm259_vm2, %v4832_v46, 0.0 }
 0x38a   :  { %v4836_v48 = vpop.eup %4401 }
 0x38b   :  { %v917_v45 = vsel %vm259_vm2, %v4836_v48, 0.0 }
 0x396   :  { %915 = vadd.xlane.f32.xlu0 %v914_v40 }
 0x39f   :  { %918 = vadd.xlane.f32.xlu1 %v917_v45 }
 0x3de   :  { %v874_v49 = vpop.xlane.xlu0 %873 }
 0x3df   :  { %v892_v50 = vsub.f32 %v483_v7, %v874_v49 }
 0x3e1   :  { %v902_v52 = vmul.f32 1.442695, %v892_v50 }
 0x3e2   :  { %v877_v53 = vpop.xlane.xlu0 %876 }
 0x3e3   :  { %4403 = vpow2.f32 %v902_v52  ;;  %v893_v54 = vsub.f32 %v559_v15, %v877_v53 }
 0x3e5   :  { %v904_v55 = vmul.f32 1.442695, %v893_v54 }
 0x3e6   :  { %v880_v56 = vpop.xlane.xlu0 %879 }
 0x3e7   :  { %4405 = vpow2.f32 %v904_v55  ;;  %v894_v57 = vsub.f32 %v635_v18, %v880_v56  ;;  %v883_v58 = vpop.xlane.xlu1 %882 }
 0x3e8   :  { %v895_v60 = vsub.f32 %v711_v25, %v883_v58 }
 0x3e9   :  { %v906_v61 = vmul.f32 1.442695, %v894_v57 }
 0x3ea   :  { %v908_v62 = vmul.f32 1.442695, %v895_v60  ;;  %v886_v63 = vpop.xlane.xlu0 %885 }
 0x3eb   :  { %4407 = vpow2.f32 %v906_v61  ;;  %v896_v1 = vsub.f32 %v787_v27, %v886_v63  ;;  %v889_v2 = vpop.xlane.xlu1 %888 }
 0x3ec   :  { %4409 = vpow2.f32 %v908_v62  ;;  %v897_v3 = vsub.f32 %v863_v32, %v889_v2  ;;  %v4371_v2 = vld [vmem:[%s5319_s14] sm:$0xff]  }
 0x3ed   :  { %v4404_v4 = vpop.eup %4403  ;;  %v910_v6 = vmul.f32 1.442695, %v896_v1 }
 0x3ee   :  { %v912_v7 = vmul.f32 1.442695, %v897_v3  ;;  %v955_v8 = vpop.permute.xlu0 %954  ;;  %v920_v11 = vsel %vm259_vm2, %v4404_v4, 0.0 }
 0x3ef   :  { %4411 = vpow2.f32 %v910_v6  ;;  %v1031_v12 = vpop.permute.xlu1 %1030  ;;  %921 = vadd.xlane.f32.xlu0 %v920_v11  ;;  %4144 = vmatpush3.msra.mxu1 %v955_v8  ;;  %v4372_v6 = vld [vmem:[%s5319_s14 + $0x8] sm:$0xff]  }
 0x3f0   :  { %4413 = vpow2.f32 %v912_v7  ;;  %4149 = vmatpush3.msra.mxu0 %v1031_v12  ;;  %4153 = vmatprep.subr.mxu1 %v4513_v9 }
 0x3f1   :  { %v4406_v14 = vpop.eup %4405  ;;  %4158 = vmatprep.subr.mxu0 %v4513_v9 }
 0x3f2   :  { %v923_v15 = vsel %vm259_vm2, %v4406_v14, 0.0  ;;  %v1259_v27 = vpop.permute.xlu0 %1258 }
 0x3f3   :  { %924 = vadd.xlane.f32.xlu1 %v923_v15  ;;  %v1107_v26 = vpop.permute.xlu1 %1106 }
 0x3f5   :  { %v4408_v16 = vpop.eup %4407 }
 0x3f6   :  { %v4410_v17 = vpop.eup %4409  ;;  %v926_v18 = vsel %vm259_vm2, %v4408_v16, 0.0 }
 0x3f7   :  { %927 = vadd.xlane.f32.xlu0 %v926_v18  ;;  %v929_v19 = vsel %vm259_vm2, %v4410_v17, 0.0  ;;  %v1183_v28 = vpop.permute.xlu1 %1182 }
 0x3f8   :  { %930 = vadd.xlane.f32.xlu1 %v929_v19 }
 0x3f9   :  { %v4846_v22 = vpop.eup %4411 }
 0x3fa   :  { %v4848_v23 = vpop.eup %4413  ;;  %v932_v24 = vsel %vm259_vm2, %v4846_v22, 0.0 }
 0x3fb   :  { %933 = vadd.xlane.f32.xlu0 %v932_v24  ;;  %v935_v25 = vsel %vm259_vm2, %v4848_v23, 0.0  ;;  %v1335_v31 = vpop.permute.xlu1 %1334 }
 0x3fc   :  { %936 = vadd.xlane.f32.xlu1 %v935_v25 }
 0x40d   :  { %1486 = vrot.lane.b32.xlu1 %v4716_v51, %s4519_s30 }
 0x411   :  { %1410 = vrot.lane.b32.xlu0 %v4698_v47, %s4519_s30 }
 0x423   :  { %v916_v30 = vpop.xlane.xlu0 %915 }
 0x424   :  { %4415 = vrcp.f32 %v916_v30 }
 0x42c   :  { %v919_v32 = vpop.xlane.xlu1 %918 }
 0x42d   :  { %4417 = vrcp.f32 %v919_v32 }
 0x42e   :  { %v4416_v33 = vpop.eup %4415 }
 0x42f   :  { %v946_v34 = vmul.f32 %v4416_v33, %v4832_v46 }
 0x431   :  { %4146 = vmatmul.mubr.msk.f32.vlgmr.msra.gmra.mrb[10].mxu1 %vm259_vm2, %v946_v34 }
 0x432   :  { %4154 = vmatpush3.msra.mxu1 %v1107_v26  ;;  %4155 = vmatprep.mubr.msk.f32.mxu1 %vm4514_vm1, %v4513_v9 }
 0x433   :  { %4163 = vmatprep.subr.mxu1 %v4513_v9 }
 0x437   :  { %v4418_v47 = vpop.eup %4417 }
 0x438   :  { %v947_v51 = vmul.f32 %v4418_v47, %v4836_v48 }
 0x43a   :  { %4151 = vmatmul.mubr.msk.f32.vlgmr.msra.gmra.mrb[10].mxu0 %vm259_vm2, %v947_v51 }
 0x43b   :  { %4159 = vmatpush3.msra.mxu0 %v1183_v28  ;;  %4160 = vmatprep.mubr.msk.f32.mxu0 %vm4514_vm1, %v4513_v9 }
 0x43c   :  { %4168 = vmatprep.subr.mxu0 %v4513_v9 }
 0x47c   :  { %v922_v37 = vpop.xlane.xlu0 %921 }
 0x47d   :  { %4419 = vrcp.f32 %v922_v37 }
 0x480   :  { %v925_v38 = vpop.xlane.xlu1 %924 }
 0x481   :  { %4421 = vrcp.f32 %v925_v38 }
 0x484   :  { %v928_v39 = vpop.xlane.xlu0 %927 }
 0x485   :  { %4423 = vrcp.f32 %v928_v39  ;;  %v931_v41 = vpop.xlane.xlu1 %930 }
 0x486   :  { %4425 = vrcp.f32 %v931_v41 }
 0x487   :  { %v4420_v42 = vpop.eup %4419 }
 0x488   :  { %v948_v43 = vmul.f32 %v4420_v42, %v4404_v4  ;;  %v934_v44 = vpop.xlane.xlu0 %933  ;;  %v3905_v42 = vld [vmem:[%s5287_s5] ss:$0 sm:$0xff] }
 0x489   :  { %4427 = vrcp.f32 %v934_v44  ;;  %v937_v46 = vpop.xlane.xlu1 %936 }
 0x48a   :  { %4429 = vrcp.f32 %v937_v46  ;;  %4156 = vmatmul.mubr.msk.f32.vlgmr.msra.gmra.mrb[12].mxu1 %vm259_vm2, %v948_v43 }
 0x48b   :  { %v4422_v40 = vpop.eup %4421  ;;  %4164 = vmatpush3.msra.mxu1 %v1259_v27  ;;  %4165 = vmatprep.mubr.msk.f32.mxu1 %vm4514_vm1, %v4513_v9 }
 0x48c   :  { %v949_v48 = vmul.f32 %v4422_v40, %v4406_v14  ;;  %4173 = vmatprep.subr.mxu1 %v4513_v9  ;;  %v1411_v53 = vpop.permute.xlu0 %1410 }
 0x48d   :  { %v1487_v55 = vpop.permute.xlu1 %1486 }
 0x48e   :  { %4161 = vmatmul.mubr.msk.f32.vlgmr.msra.gmra.mrb[12].mxu0 %vm259_vm2, %v949_v48 }
 0x48f   :  { %v4424_v45 = vpop.eup %4423  ;;  %4169 = vmatpush3.msra.mxu0 %v1335_v31  ;;  %4170 = vmatprep.mubr.msk.f32.mxu0 %vm4514_vm1, %v4513_v9 }
 0x490   :  { %v4426_v49 = vpop.eup %4425  ;;  %v950_v50 = vmul.f32 %v4424_v45, %v4408_v16  ;;  %4178 = vmatprep.subr.mxu0 %v4513_v9 }
 0x491   :  { %v951_v52 = vmul.f32 %v4426_v49, %v4410_v17 }
 0x492   :  { %4166 = vmatmul.mubr.msk.f32.vlgmr.msra.gmra.mrb[14].mxu1 %vm259_vm2, %v950_v50 }
 0x493   :  { %v4428_v54 = vpop.eup %4427  ;;  %4171 = vmatmul.mubr.msk.f32.vlgmr.msra.gmra.mrb[14].mxu0 %vm259_vm2, %v951_v52  ;;  %4174 = vmatpush3.msra.mxu1 %v1411_v53 }
 0x494   :  { %v4430_v56 = vpop.eup %4429  ;;  %v952_v57 = vmul.f32 %v4428_v54, %v4846_v22  ;;  %4179 = vmatpush3.msra.mxu0 %v1487_v55  ;;  %4175 = vmatprep.mubr.msk.f32.mxu1 %vm4514_vm1, %v4513_v9 }
 0x495   :  { %v953_v58 = vmul.f32 %v4430_v56, %v4848_v23  ;;  %4180 = vmatprep.mubr.msk.f32.mxu0 %vm4514_vm1, %v4513_v9  ;;  %4183 = vmatprep.subr.bf16.mxu1 %v4513_v9 }
 0x496   :  { %4176 = vmatmul.mubr.msk.f32.vlgmr.msra.gmra.mrb[16].mxu1 %vm259_vm2, %v952_v57  ;;  %4191 = vmatprep.subr.bf16.mxu0 %v4513_v9 }
 0x497   :  { %4181 = vmatmul.mubr.msk.f32.vlgmr.msra.gmra.mrb[16].mxu0 %vm259_vm2, %v953_v58  ;;  %4187 = vmatprep.mubr.msk.bf16.mxu1 %vm4514_vm1, %v4513_v9 }
 0x498   :  { %4195 = vmatprep.mubr.msk.bf16.mxu0 %vm4514_vm1, %v4513_v9  ;;  %4184 = vmatpush3.bf16.msra.mxu1 %v4371_v2 }
 0x499   :  { %4185 = vmatprep.subr.bf16.mxu1 %v4513_v9 }
 0x49c   :  { %4186 = vmatpush3.bf16.msra.mxu1 %v4372_v6 }
 0x49d   :  { %4199 = vmatprep.subr.bf16.mxu1 %v4513_v9 }
 0x504   :  { %v1026_v60 = vpop.f32.mrb[10].mxu1 }
 0x505   :  { %v4147_v61 = vpop.f32.mrb[11].mxu1 }
 0x50d   :  { %v1102_v62 = vpop.f32.mrb[10].mxu0 }
 0x50e   :  { %v4152_v63 = vpop.f32.mrb[11].mxu0 }
 0x55d   :  { %v1178_v1 = vpop.f32.mrb[12].mxu1 }
 0x55e   :  { %v4157_v3 = vpop.f32.mrb[13].mxu1 }
 0x561   :  { %v1254_v4 = vpop.f32.mrb[12].mxu0 }
 0x562   :  { %v4339_v7 = vpack.i.bf16 %v1254_v4, %v1178_v1  ;;  %v4162_v8 = vpop.f32.mrb[13].mxu0 }
 0x564   :  { %4340 = vrot.lane.b32.xlu0 %v4339_v7, %s4520_s25 }
 0x565   :  { %v1330_v11 = vpop.f32.mrb[14].mxu1 }
 0x566   :  { %v1406_v12 = vpop.f32.mrb[14].mxu0  ;;  %v4167_v14 = vpop.f32.mrb[15].mxu1 }
 0x567   :  { %v4344_v15 = vpack.i.bf16 %v1406_v12, %v1330_v11  ;;  %v4172_v16 = vpop.f32.mrb[15].mxu0 }
 0x569   :  { %4345 = vrot.lane.b32.xlu1 %v4344_v15, %s5309_s27  ;;  %v1482_v17 = vpop.f32.mrb[16].mxu1 }
 0x56a   :  { %v1558_v18 = vpop.f32.mrb[16].mxu0  ;;  %v4177_v19 = vpop.f32.mrb[17].mxu1 }
 0x56b   :  { %v4349_v22 = vpack.i.bf16 %v1558_v18, %v1482_v17  ;;  %v4182_v23 = vpop.f32.mrb[17].mxu0  ;;  %v3909_v17 = vld [vmem:[%s5288_s6] ss:$0 sm:$0xff] }
 0x56d   :  { %4350 = vrot.lane.b32.xlu0 %v4349_v22, %s5308_s28 }
 0x5d6   :  { %v4341_v24 = vpop.permute.xlu0 %4340 }
 0x5d7   :  { %v4343_v26 = vunpack.i.h.bf16 %v4341_v24  ;;  %v4342_v27 = vunpack.i.l.bf16 %v4341_v24  ;;  %v3910_v24 = vld [vmem:[%s5289_s7] ss:$0 sm:$0xff] }
 0x5d9   :  { %v1587_v32 = vsel %vm259_vm2, %v1102_v62, %v4343_v26  ;;  %v1586_v33 = vsel %vm259_vm2, %v1026_v60, %v4342_v27 }
 0x5db   :  { %v4346_v25 = vpop.permute.xlu1 %4345 }
 0x5dc   :  { %v4348_v28 = vunpack.i.h.bf16 %v4346_v25  ;;  %v4347_v30 = vunpack.i.l.bf16 %v4346_v25 }
 0x5de   :  { %v1590_v51 = vsel %vm1588_vm3, %v1587_v32, %v4348_v28  ;;  %v1589_v37 = vsel %vm1588_vm3, %v1586_v33, %v4347_v30  ;;  %v4375_v30 = vld [vmem:[%s5292_s10] sm:$0xff]   ;;  %v4377_v32 = vld [vmem:[%s5292_s10 + $0x10] sm:$0xff]   ;;  %v4378_v33 = vld [vmem:[%s5292_s10 + $0x18] sm:$0xff]  }
 0x5df   :  { %v4351_v31 = vpop.permute.xlu0 %4350 }
 0x5e0   :  { %v4353_v34 = vunpack.i.h.bf16 %v4351_v31  ;;  %v4352_v47 = vunpack.i.l.bf16 %v4351_v31  ;;  %v4376_v31 = vld [vmem:[%s5292_s10 + $0x8] sm:$0xff]  }
 0x5e2   :  { %v1593_v38 = vsel %vm1591_vm4, %v1590_v51, %v4353_v34  ;;  %v1592_v39 = vsel %vm1591_vm4, %v1589_v37, %v4352_v47  ;;  %v3911_v34 = vld [vmem:[%s5291_s9] ss:$0 sm:$0xff] }
 0x5e3   :  { %v1594_v41 = vpack.c.bf16 %v1593_v38, %v1592_v39 }
 0x5e5   :  { %4188 = vmatmul.mubr.msk.bf16.vlgmr.msra.gmra.mrb[20].mxu1 %vm71_vm0, %v1594_v41 }
 0x5e6   :  { %4207 = vmatprep.mubr.msk.bf16.mxu1 %vm4514_vm1, %v4513_v9  ;;  %4200 = vmatpush3.bf16.msra.mxu1 %v4375_v30 }
 0x5e7   :  { %4201 = vmatprep.subr.bf16.mxu1 %v4513_v9 }
 0x5ea   :  { %4202 = vmatpush3.bf16.msra.mxu1 %v4376_v31 }
 0x5eb   :  { %4203 = vmatprep.subr.bf16.mxu1 %v4513_v9 }
 0x5ee   :  { %4204 = vmatpush3.bf16.msra.mxu1 %v4377_v32 }
 0x5ef   :  { %4205 = vmatprep.subr.bf16.mxu1 %v4513_v9 }
 0x5f2   :  { %4206 = vmatpush3.bf16.msra.mxu1 %v4378_v33 }
 0x5f3   :  { %4229 = vmatprep.subr.mxu1 %v4513_v9 }
 0x6b8   :  { %v1655_v43 = vpop.f32.mrb[20].mxu1 }
 0x6b9   :  { %v1656_v44 = vadd.f32 %v3905_v42, %v1655_v43  ;;  %v4189_v46 = vpop.f32.mrb[21].mxu1 }
 0x6ba   :  { %v1658_v40 = vpop.f32.mrb[22].mxu1 }
 0x6bb   :  { %v1662_v48 = vadd.f32 %v1656_v44, %v4660_v35  ;;  %v1659_v45 = vadd.f32 %v3905_v42, %v1658_v40  ;;  %v4190_v49 = vpop.f32.mrb[23].mxu1  ;;  %v4373_v35 = vld [vmem:[%s5290_s8] sm:$0xff]  }
 0x6bc   :  { %4192 = vmatpush3.bf16.msra.mxu0 %v4373_v35 }
 0x6bd   :  { %v1663_v50 = vadd.f32 %v1659_v45, %v4662_v36  ;;  %v1666_v52 = vsel %vm71_vm0, %v1662_v48, 0.0  ;;  %v1674_v54 = vmul.f32 %v1662_v48, %v1662_v48  ;;  %v4374_v36 = vld [vmem:[%s5290_s8 + $0x8] sm:$0xff]   ;;  %4193 = vmatprep.subr.bf16.mxu0 %v4513_v9 }
 0x6be   :  { %1667 = vadd.xlane.f32.xlu1 %v1666_v52 }
 0x6bf   :  { %v1669_v53 = vsel %vm71_vm0, %v1663_v50, 0.0  ;;  %v1676_v55 = vsel %vm71_vm0, %v1674_v54, 0.0  ;;  %v1675_v56 = vmul.f32 %v1663_v50, %v1663_v50 }
 0x6c0   :  { %1670 = vadd.xlane.f32.xlu0 %v1669_v53  ;;  %4194 = vmatpush3.bf16.msra.mxu0 %v4374_v36 }
 0x6c1   :  { %v1679_v57 = vsel %vm71_vm0, %v1675_v56, 0.0  ;;  %4211 = vmatprep.subr.bf16.mxu0 %v4513_v9 }
 0x6c4   :  { %1677 = vadd.xlane.f32.xlu0 %v1676_v55 }
 0x6c8   :  { %1680 = vadd.xlane.f32.xlu0 %v1679_v57 }
 0x74b   :  { %v1668_v58 = vpop.xlane.xlu1 %1667 }
 0x74c   :  { %v1672_v61 = vmul.f32 0.03125, %v1668_v58 }
 0x74d   :  { %v1671_v60 = vpop.xlane.xlu0 %1670 }
 0x74e   :  { %v1684_v63 = vmul.f32 %v1672_v61, %v1672_v61  ;;  %v1673_v1 = vmul.f32 0.03125, %v1671_v60  ;;  %v1692_v14 = vsub.f32 %v1662_v48, %v1672_v61  ;;  %v3915_v61 = vld [vmem:[%s5293_s11] ss:$0 sm:$0xff] }
 0x750   :  { %v1685_v6 = vmul.f32 %v1673_v1, %v1673_v1  ;;  %v1693_v18 = vsub.f32 %v1663_v50, %v1673_v1 }
 0x751   :  { %v1678_v62 = vpop.xlane.xlu0 %1677 }
 0x752   :  { %v1682_v2 = vmul.f32 0.03125, %v1678_v62 }
 0x754   :  { %v1686_v3 = vsub.f32 %v1682_v2, %v1684_v63 }
 0x755   :  { %v1681_v4 = vpop.xlane.xlu0 %1680 }
 0x756   :  { %v1688_v7 = vadd.f32 1e-12, %v1686_v3  ;;  %v1683_v8 = vmul.f32 0.03125, %v1681_v4 }
 0x758   :  { %4431 = vrsqrt.f32 %v1688_v7  ;;  %v1687_v11 = vsub.f32 %v1683_v8, %v1685_v6 }
 0x75a   :  { %v1689_v12 = vadd.f32 1e-12, %v1687_v11 }
 0x75c   :  { %4433 = vrsqrt.f32 %v1689_v12 }
 0x762   :  { %v4432_v15 = vpop.eup %4431 }
 0x763   :  { %v1694_v16 = vmul.f32 %v4432_v15, %v1692_v14 }
 0x765   :  { %v1702_v23 = vmul.f32 %v3909_v17, %v1694_v16 }
 0x766   :  { %v4434_v19 = vpop.eup %4433 }
 0x767   :  { %v1695_v22 = vmul.f32 %v4434_v19, %v1693_v18  ;;  %v1710_v26 = vadd.f32 %v3910_v24, %v1702_v23  ;;  %v4380_v18 = vld [vmem:[%s5316_s26 + $0x18] sm:$0xff]  }
 0x769   :  { %v1703_v25 = vmul.f32 %v3909_v17, %v1695_v22  ;;  %v4379_v17 = vld [vmem:[%s5316_s26 + $0x10] sm:$0xff]  }
 0x76b   :  { %v1711_v27 = vadd.f32 %v3910_v24, %v1703_v25 }
 0x76d   :  { %v1712_v28 = vpack.c.bf16 %v1711_v27, %v1710_v26 }
 0x76f   :  { %4196 = vmatmul.mubr.msk.bf16.vlgmr.msra.gmra.mrb[20].mxu0 %vm71_vm0, %v1712_v28 }
 0x770   :  { %4215 = vmatprep.mubr.msk.bf16.mxu0 %vm4514_vm1, %v4513_v9  ;;  %4212 = vmatpush3.bf16.msra.mxu0 %v4379_v17 }
 0x771   :  { %4213 = vmatprep.subr.bf16.mxu0 %v4513_v9 }
 0x774   :  { %4214 = vmatpush3.bf16.msra.mxu0 %v4380_v18 }
 0x775   :  { %4219 = vmatprep.subr.mxu0 %v4513_v9 }
 0x842   :  { %v1773_v47 = vpop.f32.mrb[20].mxu0 }
 0x843   :  { %v1774_v51 = vadd.f32 %v3911_v34, %v1773_v47  ;;  %v4197_v37 = vpop.f32.mrb[21].mxu0 }
 0x844   :  { %v1776_v38 = vpop.f32.mrb[22].mxu0 }
 0x845   :  { %v1782_v39 = vmul.f32 0.044715, %v1774_v51  ;;  %v1777_v41 = vadd.f32 %v3911_v34, %v1776_v38  ;;  %v4198_v42 = vpop.f32.mrb[23].mxu0  ;;  %v1780_v56 = vmul.f32 0.5, %v1774_v51  ;;  %v3921_v38 = vld [vmem:[%s5294_s12] ss:$0 sm:$0xff] }
 0x847   :  { %v1784_v43 = vmul.f32 %v1782_v39, %v1774_v51  ;;  %v1783_v44 = vmul.f32 0.044715, %v1777_v41  ;;  %v1781_v57 = vmul.f32 0.5, %v1777_v41 }
 0x849   :  { %v1786_v46 = vmul.f32 %v1784_v43, %v1774_v51  ;;  %v1785_v40 = vmul.f32 %v1783_v44, %v1777_v41 }
 0x84b   :  { %v1788_v48 = vadd.f32 %v1786_v46, %v1774_v51  ;;  %v1787_v45 = vmul.f32 %v1785_v40, %v1777_v41  ;;  %v3922_v46 = vld [vmem:[%s5295_s13] ss:$0 sm:$0xff] }
 0x84d   :  { %v1790_v49 = vmul.f32 0.7978846, %v1788_v48  ;;  %v1789_v50 = vadd.f32 %v1787_v45, %v1777_v41 }
 0x84f   :  { %4435 = vtanh.f32 %v1790_v49  ;;  %v1791_v52 = vmul.f32 0.7978846, %v1789_v50  ;;  %v3928_v50 = vld [vmem:[%s5317_s1 + $0x1] ss:$0 sm:$0xff] }
 0x851   :  { %4437 = vtanh.f32 %v1791_v52 }
 0x859   :  { %v4436_v53 = vpop.eup %4435 }
 0x85a   :  { %v1794_v54 = vadd.f32 1.0, %v4436_v53 }
 0x85b   :  { %v4438_v55 = vpop.eup %4437 }
 0x85c   :  { %v1795_v35 = vadd.f32 1.0, %v4438_v55  ;;  %v1796_v36 = vmul.f32 %v1794_v54, %v1780_v56 }
 0x85e   :  { %v1797_v58 = vmul.f32 %v1795_v35, %v1781_v57 }
 0x860   :  { %v1798_v60 = vpack.c.bf16 %v1797_v58, %v1796_v36 }
 0x862   :  { %4208 = vmatmul.mubr.msk.bf16.vlgmr.msra.gmra.mrb[24].mxu1 %vm1838_vm5, %v1798_v60 }
 0x863   :  { %4231 = vmatprep.mubr.msk.f32.mxu1 %vm4514_vm1, %v4513_v9 }
 0x935   :  { %v1876_v62 = vpop.f32.mrb[24].mxu1 }
 0x936   :  { %v1877_v63 = vadd.f32 %v3915_v61, %v1876_v62  ;;  %v4209_v1 = vpop.f32.mrb[25].mxu1 }
 0x937   :  { %v1879_v2 = vpop.f32.mrb[26].mxu1 }
 0x938   :  { %v1883_v3 = vadd.f32 %v1877_v63, %v1710_v26  ;;  %v1880_v4 = vadd.f32 %v3915_v61, %v1879_v2  ;;  %v4210_v6 = vpop.f32.mrb[27].mxu1 }
 0x93a   :  { %v1884_v7 = vadd.f32 %v1880_v4, %v1711_v27  ;;  %v1887_v8 = vsel %vm71_vm0, %v1883_v3, 0.0  ;;  %v1895_v11 = vmul.f32 %v1883_v3, %v1883_v3 }
 0x93b   :  { %1888 = vadd.xlane.f32.xlu1 %v1887_v8 }
 0x93c   :  { %v1890_v12 = vsel %vm71_vm0, %v1884_v7, 0.0  ;;  %v1896_v14 = vmul.f32 %v1884_v7, %v1884_v7  ;;  %v1897_v15 = vsel %vm71_vm0, %v1895_v11, 0.0 }
 0x93d   :  { %1891 = vadd.xlane.f32.xlu0 %v1890_v12 }
 0x93e   :  { %v1900_v16 = vsel %vm71_vm0, %v1896_v14, 0.0 }
 0x93f   :  { %1898 = vadd.xlane.f32.xlu1 %v1897_v15 }
 0x941   :  { %1901 = vadd.xlane.f32.xlu0 %v1900_v16 }
 0x9c8   :  { %v1889_v19 = vpop.xlane.xlu1 %1888 }
 0x9c9   :  { %v1893_v22 = vmul.f32 0.03125, %v1889_v19 }
 0x9ca   :  { %v1892_v23 = vpop.xlane.xlu0 %1891 }
 0x9cb   :  { %v1894_v24 = vmul.f32 0.03125, %v1892_v23  ;;  %v1905_v26 = vmul.f32 %v1893_v22, %v1893_v22  ;;  %v1913_v51 = vsub.f32 %v1883_v3, %v1893_v22 }
 0x9cc   :  { %v1899_v25 = vpop.xlane.xlu1 %1898 }
 0x9cd   :  { %v1903_v27 = vmul.f32 0.03125, %v1899_v25  ;;  %v1906_v30 = vmul.f32 %v1894_v24, %v1894_v24  ;;  %v1914_v39 = vsub.f32 %v1884_v7, %v1894_v24 }
 0x9ce   :  { %v1902_v28 = vpop.xlane.xlu0 %1901 }
 0x9cf   :  { %v1907_v31 = vsub.f32 %v1903_v27, %v1905_v26  ;;  %v1904_v32 = vmul.f32 0.03125, %v1902_v28 }
 0x9d1   :  { %v1909_v33 = vadd.f32 1e-12, %v1907_v31  ;;  %v1908_v34 = vsub.f32 %v1904_v32, %v1906_v30 }
 0x9d3   :  { %4439 = vrsqrt.f32 %v1909_v33  ;;  %v1910_v47 = vadd.f32 1e-12, %v1908_v34 }
 0x9d5   :  { %4441 = vrsqrt.f32 %v1910_v47 }
 0x9dd   :  { %v4440_v37 = vpop.eup %4439 }
 0x9de   :  { %v1915_v41 = vmul.f32 %v4440_v37, %v1913_v51 }
 0x9df   :  { %v4442_v42 = vpop.eup %4441 }
 0x9e0   :  { %v1916_v43 = vmul.f32 %v4442_v42, %v1914_v39  ;;  %v1923_v44 = vmul.f32 %v3921_v38, %v1915_v41 }
 0x9e2   :  { %v1924_v40 = vmul.f32 %v3921_v38, %v1916_v43  ;;  %v4981_v48 = vadd.f32 %v3922_v46, %v1923_v44 }
 0x9e4   :  { %v4983_v45 = vadd.f32 %v3922_v46, %v1924_v40 }
 0x9e6   :  { %v1933_v49 = vpack.c.bf16 %v4983_v45, %v4981_v48 }
 0x9e8   :  { %4216 = vmatmul.mubr.msk.bf16.vlgmr.msra.gmra.mrb[24].mxu0 %vm71_vm0, %v1933_v49 }
 0x9e9   :  { %4221 = vmatprep.mubr.msk.f32.mxu0 %vm4514_vm1, %v4513_v9 }
 0xabb   :  { %v1996_v52 = vpop.f32.mrb[24].mxu0 }
 0xabc   :  { %v4993_v53 = vadd.f32 %v3928_v50, %v1996_v52  ;;  %v4217_v54 = vpop.f32.mrb[25].mxu0 }
 0xabd   :  { %v1999_v55 = vpop.f32.mrb[26].mxu0 }
 0xabe   :  { %v4995_v56 = vadd.f32 %v3928_v50, %v1999_v55  ;;  %2005 = vrot.lane.b32.xlu1 %v4993_v53, %s4516_s22  ;;  %v4218_v57 = vpop.f32.mrb[27].mxu0 }
 0xac0   :  { %2007 = vrot.lane.b32.xlu0 %v4995_v56, %s4516_s22 }
 0xac2   :  { %2009 = vrot.lane.b32.xlu1 %v4993_v53, %s4515_s15 }
 0xac4   :  { %2015 = vrot.lane.b32.xlu0 %v4995_v56, %s4517_s23 }
 0xac6   :  { %2011 = vrot.lane.b32.xlu1 %v4995_v56, %s4515_s15 }
 0xac8   :  { %2093 = vrot.lane.b32.xlu0 %v4995_v56, %s4518_s24 }
 0xaca   :  { %2013 = vrot.lane.b32.xlu1 %v4993_v53, %s4517_s23 }
 0xace   :  { %2017 = vrot.lane.b32.xlu1 %v4993_v53, %s4518_s24 }
 0xb30   :  { %v5013_v35 = vpop.permute.xlu1 %2005 }
 0xb31   :  { %2169 = vrot.lane.b32.xlu1 %v5013_v35, %s4518_s24 }
 0xb32   :  { %v5017_v36 = vpop.permute.xlu0 %2007 }
 0xb33   :  { %2245 = vrot.lane.b32.xlu0 %v5017_v36, %s4518_s24 }
 0xb34   :  { %v5021_v58 = vpop.permute.xlu1 %2009 }
 0xb35   :  { %2321 = vrot.lane.b32.xlu1 %v5021_v58, %s4518_s24 }
 0xb36   :  { %v5029_v61 = vpop.permute.xlu0 %2015 }
 0xb38   :  { %v5025_v60 = vpop.permute.xlu1 %2011 }
 0xb39   :  { %2397 = vrot.lane.b32.xlu0 %v5025_v60, %s4518_s24 }
 0xb3a   :  { %v2094_v1 = vpop.permute.xlu0 %2093 }
 0xb3c   :  { %v5031_v62 = vpop.permute.xlu1 %2013 }
 0xb3d   :  { %2473 = vrot.lane.b32.xlu1 %v5031_v62, %s4518_s24  ;;  %2549 = vrot.lane.b32.xlu0 %v5029_v61, %s4518_s24  ;;  %s5320_s24 = smov 16  }
 0xb40   :  { %v2018_v63 = vpop.permute.xlu1 %2017 }
 0xb41   :  { %4220 = vmatpush3.xpose.msk.msra.mxu0 %vm259_vm2, %v2018_v63 }
 0xb42   :  { %4224 = vmatprep.subr.mxu0 %v4513_v9 }
 0xb44   :  { %4222 = vmatmul.mubr.msk.f32.vlgmr.msra.gmra.mrb[18].mxu0 %vm259_vm2, %v4993_v53 }
 0xb45   :  { %4225 = vmatpush3.xpose.msk.msra.mxu0 %vm259_vm2, %v2094_v1  ;;  %4226 = vmatprep.mubr.msk.f32.mxu0 %vm4514_vm1, %v4513_v9 }
 0xb46   :  { %4234 = vmatprep.subr.mxu0 %v4513_v9 }
 0xb48   :  { %4227 = vmatmul.mubr.msk.f32.vlgmr.msra.gmra.mrb[28].mxu0 %vm259_vm2, %v4995_v56 }
 0xb49   :  { %4236 = vmatprep.mubr.msk.f32.mxu0 %vm4514_vm1, %v4513_v9 }
 0xba3   :  { %v2170_v2 = vpop.permute.xlu1 %2169 }
 0xba4   :  { %4230 = vmatpush3.xpose.msk.msra.mxu1 %vm259_vm2, %v2170_v2 }
 0xba5   :  { %v2246_v3 = vpop.permute.xlu0 %2245  ;;  %4239 = vmatprep.subr.mxu1 %v4513_v9 }
 0xba6   :  { %4235 = vmatpush3.xpose.msk.msra.mxu0 %vm259_vm2, %v2246_v3 }
 0xba7   :  { %4232 = vmatmul.mubr.msk.f32.vlgmr.msra.gmra.mrb[18].mxu1 %vm259_vm2, %v5013_v35  ;;  %v2322_v4 = vpop.permute.xlu1 %2321  ;;  %4244 = vmatprep.subr.mxu0 %v4513_v9 }
 0xba8   :  { %4240 = vmatpush3.xpose.msk.msra.mxu1 %vm259_vm2, %v2322_v4  ;;  %4241 = vmatprep.mubr.msk.f32.mxu1 %vm4514_vm1, %v4513_v9 }
 0xba9   :  { %4237 = vmatmul.mubr.msk.f32.vlgmr.msra.gmra.mrb[30].mxu0 %vm259_vm2, %v5017_v36  ;;  %4249 = vmatprep.subr.mxu1 %v4513_v9 }
 0xbaa   :  { %4246 = vmatprep.mubr.msk.f32.mxu0 %vm4514_vm1, %v4513_v9 }
 0xbab   :  { %4242 = vmatmul.mubr.msk.f32.vlgmr.msra.gmra.mrb[28].mxu1 %vm259_vm2, %v5021_v58  ;;  %v2398_v6 = vpop.permute.xlu0 %2397 }
 0xbac   :  { %4245 = vmatpush3.xpose.msk.msra.mxu0 %vm259_vm2, %v2398_v6  ;;  %4251 = vmatprep.mubr.msk.f32.mxu1 %vm4514_vm1, %v4513_v9 }
 0xbad   :  { %4254 = vmatprep.subr.mxu0 %v4513_v9 }
 0xbaf   :  { %v2474_v7 = vpop.permute.xlu1 %2473  ;;  %4247 = vmatmul.mubr.msk.f32.vlgmr.msra.gmra.mrb[32].mxu0 %vm259_vm2, %v5025_v60  ;;  %v2550_v8 = vpop.permute.xlu0 %2549 }
 0xbb0   :  { %4250 = vmatpush3.xpose.msk.msra.mxu1 %vm259_vm2, %v2474_v7  ;;  %4255 = vmatpush3.xpose.msk.msra.mxu0 %vm259_vm2, %v2550_v8 }
 0xbb1   :  { %4256 = vmatprep.mubr.msk.f32.mxu0 %vm4514_vm1, %v4513_v9  ;;  %4259 = vmatprep.subr.mxu1 %v4513_v9 }
 0xbb2   :  { %4264 = vmatprep.subr.mxu0 %v4513_v9 }
 0xbb3   :  { %4252 = vmatmul.mubr.msk.f32.vlgmr.msra.gmra.mrb[30].mxu1 %vm259_vm2, %v5031_v62  ;;  %4257 = vmatmul.mubr.msk.f32.vlgmr.msra.gmra.mrb[34].mxu0 %vm259_vm2, %v5029_v61 }
 0xbb4   :  { %4266 = vmatprep.mubr.msk.f32.mxu0 %vm4514_vm1, %v4513_v9  ;;  %4261 = vmatprep.mubr.msk.f32.mxu1 %vm4514_vm1, %v4513_v9 }
 0xc17   :  { %v2089_v11 = vpop.f32.mrb[18].mxu0 }
 0xc18   :  { %v2090_v12 = vadd.f32 %v4767_v59, %v2089_v11  ;;  %v4223_v14 = vpop.f32.mrb[19].mxu0 }
 0xc1a   :  { %v2625_v15 = vsel %vm259_vm2, %v2090_v12, -inf }
 0xc1b   :  { %2626 = vmax.xlane.f32.xlu1 %v2625_v15  ;;  %v2165_v16 = vpop.f32.mrb[28].mxu0 }
 0xc1c   :  { %v2166_v17 = vadd.f32 %v4774_v0, %v2165_v16  ;;  %v4228_v18 = vpop.f32.mrb[29].mxu0 }
 0xc1e   :  { %v2628_v19 = vsel %vm259_vm2, %v2166_v17, -inf }
 0xc1f   :  { %2629 = vmax.xlane.f32.xlu0 %v2628_v19 }
 0xc7a   :  { %v2241_v22 = vpop.f32.mrb[18].mxu1 }
 0xc7b   :  { %v2242_v23 = vadd.f32 %v4781_v5, %v2241_v22  ;;  %v4233_v24 = vpop.f32.mrb[19].mxu1 }
 0xc7c   :  { %v2317_v25 = vpop.f32.mrb[30].mxu0 }
 0xc7d   :  { %v2318_v26 = vadd.f32 %v4787_v10, %v2317_v25  ;;  %v4238_v27 = vpop.f32.mrb[31].mxu0  ;;  %v2631_v59 = vsel %vm259_vm2, %v2242_v23, -inf }
 0xc7e   :  { %v2393_v28 = vpop.f32.mrb[28].mxu1  ;;  %2632 = vmax.xlane.f32.xlu0 %v2631_v59 }
 0xc7f   :  { %v2394_v30 = vadd.f32 %v4793_v13, %v2393_v28  ;;  %v4243_v31 = vpop.f32.mrb[29].mxu1  ;;  %v2634_v32 = vsel %vm259_vm2, %v2318_v26, -inf }
 0xc81   :  { %v2637_v0 = vsel %vm259_vm2, %v2394_v30, -inf }
 0xc82   :  { %2638 = vmax.xlane.f32.xlu1 %v2637_v0  ;;  %2635 = vmax.xlane.f32.xlu0 %v2634_v32  ;;  %v2469_v33 = vpop.f32.mrb[32].mxu0 }
 0xc83   :  { %v2470_v5 = vadd.f32 %v4801_v20, %v2469_v33  ;;  %v4248_v34 = vpop.f32.mrb[33].mxu0 }
 0xc85   :  { %v2640_v10 = vsel %vm259_vm2, %v2470_v5, -inf }
 0xc86   :  { %v2545_v47 = vpop.f32.mrb[30].mxu1  ;;  %2641 = vmax.xlane.f32.xlu0 %v2640_v10  ;;  %v2621_v51 = vpop.f32.mrb[34].mxu0 }
 0xc87   :  { %v2546_v37 = vadd.f32 %v4806_v21, %v2545_v47  ;;  %v2622_v13 = vadd.f32 %v4814_v29, %v2621_v51  ;;  %v4253_v38 = vpop.f32.mrb[31].mxu1  ;;  %v4258_v39 = vpop.f32.mrb[35].mxu0 }
 0xc89   :  { %v2643_v41 = vsel %vm259_vm2, %v2546_v37, -inf  ;;  %v2646_v42 = vsel %vm259_vm2, %v2622_v13, -inf }
 0xc8a   :  { %2644 = vmax.xlane.f32.xlu1 %v2643_v41  ;;  %2647 = vmax.xlane.f32.xlu0 %v2646_v42 }
 0xc9b   :  { %2713 = vrot.lane.b32.xlu1 %v4993_v53, %s4519_s30 }
 0xc9f   :  { %2865 = vrot.lane.b32.xlu1 %v5013_v35, %s4519_s30 }
 0xca0   :  { %2789 = vrot.lane.b32.xlu0 %v4995_v56, %s4519_s30 }
 0xca3   :  { %2941 = vrot.lane.b32.xlu1 %v5017_v36, %s4519_s30 }
 0xca4   :  { %3093 = vrot.lane.b32.xlu0 %v5025_v60, %s4519_s30 }
 0xca7   :  { %3017 = vrot.lane.b32.xlu1 %v5021_v58, %s4519_s30 }
 0xca8   :  { %v2627_v43 = vpop.xlane.xlu1 %2626 }
 0xca9   :  { %v2649_v44 = vsub.f32 %v2090_v12, %v2627_v43 }
 0xcab   :  { %v2657_v46 = vmul.f32 1.442695, %v2649_v44 }
 0xcac   :  { %v2630_v20 = vpop.xlane.xlu0 %2629 }
 0xcad   :  { %v2650_v21 = vsub.f32 %v2166_v17, %v2630_v20 }
 0xcaf   :  { %v2659_v29 = vmul.f32 1.442695, %v2650_v21 }
 0xcb1   :  { %4443 = vpow2.f32 %v2659_v29 }
 0xcb2   :  { %4445 = vpow2.f32 %v2657_v46 }
 0xcbb   :  { %v5113_v40 = vpop.eup %4443 }
 0xcbc   :  { %v2676_v49 = vsel %vm259_vm2, %v5113_v40, 0.0  ;;  %v5117_v50 = vpop.eup %4445 }
 0xcbd   :  { %v2673_v52 = vsel %vm259_vm2, %v5117_v50, 0.0 }
 0xcc3   :  { %2677 = vadd.xlane.f32.xlu0 %v2676_v49 }
 0xccb   :  { %2674 = vadd.xlane.f32.xlu1 %v2673_v52 }
 0xd0b   :  { %v2633_v53 = vpop.xlane.xlu0 %2632 }
 0xd0c   :  { %v2651_v54 = vsub.f32 %v2242_v23, %v2633_v53 }
 0xd0e   :  { %v2661_v55 = vmul.f32 1.442695, %v2651_v54 }
 0xd0f   :  { %v2639_v56 = vpop.xlane.xlu1 %2638  ;;  %v2636_v57 = vpop.xlane.xlu0 %2635 }
 0xd10   :  { %4447 = vpow2.f32 %v2661_v55  ;;  %v2653_v35 = vsub.f32 %v2394_v30, %v2639_v56  ;;  %v2652_v36 = vsub.f32 %v2318_v26, %v2636_v57 }
 0xd12   :  { %v2665_v58 = vmul.f32 1.442695, %v2653_v35  ;;  %v2663_v60 = vmul.f32 1.442695, %v2652_v36  ;;  %v4381_v36 = vld [vmem:[%s5319_s14 + $0x10] sm:$0xff]  }
 0xd13   :  { %v2642_v63 = vpop.xlane.xlu0 %2641 }
 0xd14   :  { %4449 = vpow2.f32 %v2665_v58  ;;  %v2654_v1 = vsub.f32 %v2470_v5, %v2642_v63  ;;  %v4382_v63 = vld [vmem:[%s5319_s14 + $0x18] sm:$0xff]  }
 0xd15   :  { %4451 = vpow2.f32 %v2663_v60 }
 0xd16   :  { %v2667_v2 = vmul.f32 1.442695, %v2654_v1 }
 0xd17   :  { %v2645_v3 = vpop.xlane.xlu1 %2644  ;;  %v2648_v4 = vpop.xlane.xlu0 %2647 }
 0xd18   :  { %4453 = vpow2.f32 %v2667_v2  ;;  %v2655_v6 = vsub.f32 %v2546_v37, %v2645_v3  ;;  %v2656_v7 = vsub.f32 %v2622_v13, %v2648_v4 }
 0xd1a   :  { %v4448_v8 = vpop.eup %4447  ;;  %v2669_v11 = vmul.f32 1.442695, %v2655_v6  ;;  %v2671_v12 = vmul.f32 1.442695, %v2656_v7 }
 0xd1b   :  { %v2714_v14 = vpop.permute.xlu1 %2713  ;;  %v2790_v15 = vpop.permute.xlu0 %2789  ;;  %v2679_v16 = vsel %vm259_vm2, %v4448_v8, 0.0 }
 0xd1c   :  { %4455 = vpow2.f32 %v2669_v11  ;;  %4260 = vmatpush3.msra.mxu1 %v2714_v14  ;;  %2680 = vadd.xlane.f32.xlu1 %v2679_v16 }
 0xd1d   :  { %4457 = vpow2.f32 %v2671_v12  ;;  %4265 = vmatpush3.msra.mxu0 %v2790_v15  ;;  %4269 = vmatprep.subr.mxu1 %v4513_v9 }
 0xd1e   :  { %v4450_v17 = vpop.eup %4449  ;;  %4274 = vmatprep.subr.mxu0 %v4513_v9 }
 0xd1f   :  { %v4452_v18 = vpop.eup %4451  ;;  %v2685_v19 = vsel %vm259_vm2, %v4450_v17, 0.0  ;;  %v2866_v28 = vpop.permute.xlu1 %2865 }
 0xd20   :  { %2686 = vadd.xlane.f32.xlu1 %v2685_v19  ;;  %v2682_v22 = vsel %vm259_vm2, %v4452_v18, 0.0  ;;  %v3094_v30 = vpop.permute.xlu0 %3093 }
 0xd21   :  { %2683 = vadd.xlane.f32.xlu0 %v2682_v22 }
 0xd22   :  { %v4454_v23 = vpop.eup %4453 }
 0xd23   :  { %v2688_v24 = vsel %vm259_vm2, %v4454_v23, 0.0  ;;  %v2942_v31 = vpop.permute.xlu1 %2941 }
 0xd25   :  { %2689 = vadd.xlane.f32.xlu0 %v2688_v24 }
 0xd26   :  { %v5127_v25 = vpop.eup %4455 }
 0xd27   :  { %v5129_v26 = vpop.eup %4457  ;;  %v2691_v27 = vsel %vm259_vm2, %v5127_v25, 0.0  ;;  %v3018_v32 = vpop.permute.xlu1 %3017 }
 0xd28   :  { %2692 = vadd.xlane.f32.xlu1 %v2691_v27  ;;  %v2694_v59 = vsel %vm259_vm2, %v5129_v26, 0.0 }
 0xd29   :  { %2695 = vadd.xlane.f32.xlu0 %v2694_v59 }
 0xd39   :  { %3169 = vrot.lane.b32.xlu1 %v5031_v62, %s4519_s30 }
 0xd3f   :  { %3245 = vrot.lane.b32.xlu0 %v5029_v61, %s4519_s30  ;;  %s5321_s30 = smov 24  }
 0xd50   :  { %v2678_v0 = vpop.xlane.xlu0 %2677 }
 0xd51   :  { %4459 = vrcp.f32 %v2678_v0 }
 0xd58   :  { %v2675_v33 = vpop.xlane.xlu1 %2674 }
 0xd59   :  { %4461 = vrcp.f32 %v2675_v33 }
 0xd5b   :  { %v4460_v5 = vpop.eup %4459 }
 0xd5c   :  { %v2706_v34 = vmul.f32 %v4460_v5, %v5113_v40  ;;  %v3961_v5 = vld [vmem:[%s5287_s5 + $0x1] ss:$0 sm:$0xff] }
 0xd5e   :  { %4267 = vmatmul.mubr.msk.f32.vlgmr.msra.gmra.mrb[36].mxu0 %vm259_vm2, %v2706_v34 }
 0xd5f   :  { %4275 = vmatpush3.msra.mxu0 %v2942_v31  ;;  %4276 = vmatprep.mubr.msk.f32.mxu0 %vm4514_vm1, %v4513_v9 }
 0xd60   :  { %4284 = vmatprep.subr.mxu0 %v4513_v9 }
 0xd63   :  { %v4462_v61 = vpop.eup %4461 }
 0xd64   :  { %v2705_v62 = vmul.f32 %v4462_v61, %v5117_v50 }
 0xd66   :  { %4262 = vmatmul.mubr.msk.f32.vlgmr.msra.gmra.mrb[32].mxu1 %vm259_vm2, %v2705_v62 }
 0xd67   :  { %4270 = vmatpush3.msra.mxu1 %v2866_v28  ;;  %4271 = vmatprep.mubr.msk.f32.mxu1 %vm4514_vm1, %v4513_v9 }
 0xd68   :  { %4279 = vmatprep.subr.mxu1 %v4513_v9 }
 0xda9   :  { %v2681_v10 = vpop.xlane.xlu1 %2680 }
 0xdaa   :  { %4463 = vrcp.f32 %v2681_v10 }
 0xdad   :  { %v2687_v47 = vpop.xlane.xlu1 %2686 }
 0xdae   :  { %4465 = vrcp.f32 %v2687_v47  ;;  %v2684_v51 = vpop.xlane.xlu0 %2683 }
 0xdaf   :  { %4467 = vrcp.f32 %v2684_v51 }
 0xdb2   :  { %v2690_v37 = vpop.xlane.xlu0 %2689 }
 0xdb3   :  { %4469 = vrcp.f32 %v2690_v37 }
 0xdb4   :  { %v4464_v13 = vpop.eup %4463 }
 0xdb5   :  { %v2707_v38 = vmul.f32 %v4464_v13, %v4448_v8  ;;  %v2693_v39 = vpop.xlane.xlu1 %2692 }
 0xdb6   :  { %4471 = vrcp.f32 %v2693_v39  ;;  %v2696_v41 = vpop.xlane.xlu0 %2695 }
 0xdb7   :  { %4473 = vrcp.f32 %v2696_v41  ;;  %4272 = vmatmul.mubr.msk.f32.vlgmr.msra.gmra.mrb[34].mxu1 %vm259_vm2, %v2707_v38 }
 0xdb8   :  { %v4466_v42 = vpop.eup %4465  ;;  %4280 = vmatpush3.msra.mxu1 %v3018_v32  ;;  %4281 = vmatprep.mubr.msk.f32.mxu1 %vm4514_vm1, %v4513_v9 }
 0xdb9   :  { %v4468_v20 = vpop.eup %4467  ;;  %v2709_v21 = vmul.f32 %v4466_v42, %v4450_v17  ;;  %v3170_v29 = vpop.permute.xlu1 %3169  ;;  %4289 = vmatprep.subr.mxu1 %v4513_v9 }
 0xdba   :  { %v2708_v43 = vmul.f32 %v4468_v20, %v4452_v18  ;;  %v3246_v49 = vpop.permute.xlu0 %3245 }
 0xdbb   :  { %4282 = vmatmul.mubr.msk.f32.vlgmr.msra.gmra.mrb[36].mxu1 %vm259_vm2, %v2709_v21 }
 0xdbc   :  { %4277 = vmatmul.mubr.msk.f32.vlgmr.msra.gmra.mrb[38].mxu0 %vm259_vm2, %v2708_v43  ;;  %4290 = vmatpush3.msra.mxu1 %v3170_v29 }
 0xdbd   :  { %v4470_v44 = vpop.eup %4469  ;;  %4285 = vmatpush3.msra.mxu0 %v3094_v30  ;;  %4286 = vmatprep.mubr.msk.f32.mxu0 %vm4514_vm1, %v4513_v9 }
 0xdbe   :  { %v2710_v46 = vmul.f32 %v4470_v44, %v4454_v23  ;;  %4294 = vmatprep.subr.mxu0 %v4513_v9  ;;  %4291 = vmatprep.mubr.msk.f32.mxu1 %vm4514_vm1, %v4513_v9 }
 0xdbf   :  { %4299 = vmatprep.subr.bf16.mxu1 %v4513_v9 }
 0xdc0   :  { %v4472_v40 = vpop.eup %4471  ;;  %4287 = vmatmul.mubr.msk.f32.vlgmr.msra.gmra.mrb[40].mxu0 %vm259_vm2, %v2710_v46 }
 0xdc1   :  { %v4474_v50 = vpop.eup %4473  ;;  %v2711_v52 = vmul.f32 %v4472_v40, %v5127_v25  ;;  %4295 = vmatpush3.msra.mxu0 %v3246_v49  ;;  %4296 = vmatprep.mubr.msk.f32.mxu0 %vm4514_vm1, %v4513_v9 }
 0xdc2   :  { %v2712_v53 = vmul.f32 %v4474_v50, %v5129_v26  ;;  %4307 = vmatprep.subr.bf16.mxu0 %v4513_v9 }
 0xdc3   :  { %4292 = vmatmul.mubr.msk.f32.vlgmr.msra.gmra.mrb[38].mxu1 %vm259_vm2, %v2711_v52 }
 0xdc4   :  { %4297 = vmatmul.mubr.msk.f32.vlgmr.msra.gmra.mrb[42].mxu0 %vm259_vm2, %v2712_v53  ;;  %4303 = vmatprep.mubr.msk.bf16.mxu1 %vm4514_vm1, %v4513_v9 }
 0xdc5   :  { %4311 = vmatprep.mubr.msk.bf16.mxu0 %vm4514_vm1, %v4513_v9  ;;  %4300 = vmatpush3.bf16.msra.mxu1 %v4381_v36 }
 0xdc6   :  { %4301 = vmatprep.subr.bf16.mxu1 %v4513_v9 }
 0xdc9   :  { %4302 = vmatpush3.bf16.msra.mxu1 %v4382_v63  ;;  %v3967_v63 = vld [vmem:[%s5288_s6 + $0x1] ss:$0 sm:$0xff]  ;;  %s4524_s6 = smov [#allocation2]  }
 0xdca   :  { %4315 = vmatprep.subr.bf16.mxu1 %v4513_v9  ;;  %s3859_s4 = sshll.u32 %s4524_s6, 4  ;;  %s3860_s4 = int_to_ptr.vmem [resolvable:$true] %s3859_s4 }
 0xdcb   :  { %p4494_p1 = scmp.lt.s32.totalorder %s3860_s4, %s3860_s4 }
 0xe31   :  { %v2861_v54 = vpop.f32.mrb[36].mxu0 }
 0xe32   :  { %v4268_v55 = vpop.f32.mrb[37].mxu0 }
 0xe39   :  { %v2785_v56 = vpop.f32.mrb[32].mxu1 }
 0xe3a   :  { %v4263_v57 = vpop.f32.mrb[33].mxu1 }
 0xe8a   :  { %v2937_v35 = vpop.f32.mrb[34].mxu1 }
 0xe8b   :  { %v4273_v58 = vpop.f32.mrb[35].mxu1 }
 0xe8e   :  { %v3089_v60 = vpop.f32.mrb[36].mxu1 }
 0xe8f   :  { %v3013_v1 = vpop.f32.mrb[38].mxu0  ;;  %v4283_v2 = vpop.f32.mrb[37].mxu1 }
 0xe90   :  { %v4354_v3 = vpack.i.bf16 %v3013_v1, %v2937_v35  ;;  %v4278_v4 = vpop.f32.mrb[39].mxu0 }
 0xe92   :  { %4355 = vrot.lane.b32.xlu1 %v4354_v3, %s4520_s25 }
 0xe93   :  { %v3165_v6 = vpop.f32.mrb[40].mxu0 }
 0xe94   :  { %v4359_v7 = vpack.i.bf16 %v3165_v6, %v3089_v60  ;;  %v4288_v8 = vpop.f32.mrb[41].mxu0  ;;  %v3968_v6 = vld [vmem:[%s5289_s7 + $0x1] ss:$0 sm:$0xff] }
 0xe96   :  { %4360 = vrot.lane.b32.xlu0 %v4359_v7, %s5320_s24  ;;  %v3241_v11 = vpop.f32.mrb[38].mxu1 }
 0xe97   :  { %v3317_v12 = vpop.f32.mrb[42].mxu0  ;;  %v4293_v14 = vpop.f32.mrb[39].mxu1 }
 0xe98   :  { %v4364_v15 = vpack.i.bf16 %v3317_v12, %v3241_v11  ;;  %v4298_v16 = vpop.f32.mrb[43].mxu0  ;;  %v4385_v14 = vld [vmem:[%s5292_s10 + $0x20] sm:$0xff]  }
 0xe99   :  { %v4387_v16 = vld [vmem:[%s5292_s10 + $0x30] sm:$0xff]  }
 0xe9a   :  { %4365 = vrot.lane.b32.xlu1 %v4364_v15, %s5321_s30  ;;  %v4386_v15 = vld [vmem:[%s5292_s10 + $0x28] sm:$0xff]  }
 0xf04   :  { %v4356_v17 = vpop.permute.xlu1 %4355 }
 0xf05   :  { %v4358_v19 = vunpack.i.h.bf16 %v4356_v17  ;;  %v4357_v22 = vunpack.i.l.bf16 %v4356_v17  ;;  %v4388_v17 = vld [vmem:[%s5292_s10 + $0x38] sm:$0xff]  }
 0xf07   :  { %v3346_v26 = vsel %vm259_vm2, %v2861_v54, %v4358_v19  ;;  %v3345_v27 = vsel %vm259_vm2, %v2785_v56, %v4357_v22 }
 0xf08   :  { %v4361_v18 = vpop.permute.xlu0 %4360 }
 0xf09   :  { %v4363_v23 = vunpack.i.h.bf16 %v4361_v18  ;;  %v4362_v24 = vunpack.i.l.bf16 %v4361_v18  ;;  %v3974_v18 = vld [vmem:[%s5291_s9 + $0x1] ss:$0 sm:$0xff] }
 0xf0b   :  { %v3348_v30 = vsel %vm1588_vm3, %v3346_v26, %v4363_v23  ;;  %v3347_v31 = vsel %vm1588_vm3, %v3345_v27, %v4362_v24 }
 0xf0c   :  { %v4366_v25 = vpop.permute.xlu1 %4365 }
 0xf0d   :  { %v4368_v59 = vunpack.i.h.bf16 %v4366_v25  ;;  %v4367_v28 = vunpack.i.l.bf16 %v4366_v25 }
 0xf0f   :  { %v3350_v0 = vsel %vm1591_vm4, %v3348_v30, %v4368_v59  ;;  %v3349_v32 = vsel %vm1591_vm4, %v3347_v31, %v4367_v28 }
 0xf10   :  { %v3351_v33 = vpack.c.bf16 %v3350_v0, %v3349_v32 }
 0xf12   :  { %4304 = vmatmul.mubr.msk.bf16.vlgmr.msra.gmra.mrb[40].mxu1 %vm71_vm0, %v3351_v33 }
 0xf13   :  { %4323 = vmatprep.mubr.msk.bf16.mxu1 %vm4514_vm1, %v4513_v9  ;;  %4316 = vmatpush3.bf16.msra.mxu1 %v4385_v14 }
 0xf14   :  { %4317 = vmatprep.subr.bf16.mxu1 %v4513_v9 }
 0xf17   :  { %4318 = vmatpush3.bf16.msra.mxu1 %v4386_v15 }
 0xf18   :  { %4319 = vmatprep.subr.bf16.mxu1 %v4513_v9 }
 0xf1b   :  { %4320 = vmatpush3.bf16.msra.mxu1 %v4387_v16  ;;  %v3995_v16 = vld [vmem:[%s5294_s12 + $0x1] ss:$0 sm:$0xff] }
 0xf1c   :  { %4321 = vmatprep.subr.bf16.mxu1 %v4513_v9 }
 0xf1f   :  { %4322 = vmatpush3.bf16.msra.mxu1 %v4388_v17 }
 0xfe5   :  { %v3414_v34 = vpop.f32.mrb[40].mxu1 }
 0xfe6   :  { %v3415_v61 = vadd.f32 %v3961_v5, %v3414_v34  ;;  %v4305_v62 = vpop.f32.mrb[41].mxu1 }
 0xfe7   :  { %v3417_v10 = vpop.f32.mrb[42].mxu1 }
 0xfe8   :  { %v3421_v47 = vadd.f32 %v3415_v61, %v4981_v48  ;;  %v3418_v51 = vadd.f32 %v3961_v5, %v3417_v10  ;;  %v4306_v37 = vpop.f32.mrb[43].mxu1  ;;  %v4383_v48 = vld [vmem:[%s5290_s8 + $0x10] sm:$0xff]  }
 0xfe9   :  { %4308 = vmatpush3.bf16.msra.mxu0 %v4383_v48 }
 0xfea   :  { %v3422_v13 = vadd.f32 %v3418_v51, %v4983_v45  ;;  %v3427_v38 = vsel %vm71_vm0, %v3421_v47, 0.0  ;;  %v3435_v39 = vmul.f32 %v3421_v47, %v3421_v47  ;;  %v4384_v45 = vld [vmem:[%s5290_s8 + $0x18] sm:$0xff]   ;;  %4309 = vmatprep.subr.bf16.mxu0 %v4513_v9 }
 0xfeb   :  { %3428 = vadd.xlane.f32.xlu0 %v3427_v38 }
 0xfec   :  { %v3430_v41 = vsel %vm71_vm0, %v3422_v13, 0.0  ;;  %v3437_v42 = vsel %vm71_vm0, %v3435_v39, 0.0  ;;  %v3436_v20 = vmul.f32 %v3422_v13, %v3422_v13  ;;  %v3987_v39 = vld [vmem:[%s5293_s11 + $0x1] ss:$0 sm:$0xff] }
 0xfed   :  { %3431 = vadd.xlane.f32.xlu1 %v3430_v41  ;;  %4310 = vmatpush3.bf16.msra.mxu0 %v4384_v45 }
 0xfee   :  { %v3440_v21 = vsel %vm71_vm0, %v3436_v20, 0.0 }
 0xfef   :  { %3438 = vadd.xlane.f32.xlu0 %v3437_v42 }
 0xff3   :  { %3441 = vadd.xlane.f32.xlu0 %v3440_v21 }
0x1078   :  { %v3429_v29 = vpop.xlane.xlu0 %3428 }
0x1079   :  { %v3433_v43 = vmul.f32 0.03125, %v3429_v29 }
0x107a   :  { %v3432_v44 = vpop.xlane.xlu1 %3431 }
0x107b   :  { %v3445_v40 = vmul.f32 %v3433_v43, %v3433_v43  ;;  %v3434_v49 = vmul.f32 0.03125, %v3432_v44  ;;  %v3453_v36 = vsub.f32 %v3421_v47, %v3433_v43 }
0x107c   :  { %v3439_v46 = vpop.xlane.xlu0 %3438 }
0x107d   :  { %v3443_v50 = vmul.f32 0.03125, %v3439_v46  ;;  %v3446_v54 = vmul.f32 %v3434_v49, %v3434_v49  ;;  %v3454_v1 = vsub.f32 %v3422_v13, %v3434_v49 }
0x107f   :  { %v3447_v52 = vsub.f32 %v3443_v50, %v3445_v40 }
0x1080   :  { %v3442_v53 = vpop.xlane.xlu0 %3441 }
0x1081   :  { %v3449_v55 = vadd.f32 1e-12, %v3447_v52  ;;  %v3444_v56 = vmul.f32 0.03125, %v3442_v53  ;;  %v4389_v53 = vld [vmem:[%s5298_s16] ss:$8 sps:$4 sm:$0xff]  }
0x1083   :  { %4475 = vrsqrt.f32 %v3449_v55  ;;  %v3448_v57 = vsub.f32 %v3444_v56, %v3446_v54  ;;  %v4391_v54 = vld [vmem:[%s5298_s16 + $0x4] ss:$8 sps:$4 sm:$0xff]   ;;  %v4394_v55 = vld [vmem:[%s5298_s16 + $0x14] ss:$8 sps:$4 sm:$0xff]   ;;  %v4523_v56 = vmov 0  }
0x1084   :  { %3748 = vmatprep.subr.bf16.mxu0 %v4391_v54 }
0x1085   :  { %v3450_v35 = vadd.f32 1e-12, %v3448_v57  ;;  %v4392_v57 = vld [vmem:[%s5298_s16 + $0x10] ss:$8 sps:$4 sm:$0xff]  }
0x1087   :  { %4477 = vrsqrt.f32 %v3450_v35 }
0x108d   :  { %v4476_v58 = vpop.eup %4475 }
0x108e   :  { %v3455_v60 = vmul.f32 %v4476_v58, %v3453_v36 }
0x1090   :  { %v3463_v4 = vmul.f32 %v3967_v63, %v3455_v60 }
0x1091   :  { %v4478_v2 = vpop.eup %4477 }
0x1092   :  { %v3456_v3 = vmul.f32 %v4478_v2, %v3454_v1  ;;  %v3471_v8 = vadd.f32 %v3968_v6, %v3463_v4 }
0x1094   :  { %v3464_v7 = vmul.f32 %v3967_v63, %v3456_v3 }
0x1096   :  { %v3472_v11 = vadd.f32 %v3968_v6, %v3464_v7 }
0x1098   :  { %v3473_v12 = vpack.c.bf16 %v3472_v11, %v3471_v8 }
0x109a   :  { %4312 = vmatmul.mubr.msk.bf16.vlgmr.msra.gmra.mrb[44].mxu0 %vm71_vm0, %v3473_v12 }
0x109b   :  { %3780 = vmatprep.mubr.bf16.mxu0 %v4523_v56  ;;  %3749 = vmatpush1.bf16.msra.mxu0 %v4389_v53  ;;  %v3790_v56 = vld [vmem:[%s5301_s19] sm:$0x3] }
0x109c   :  { %3750 = vmatprep.subr.bf16.mxu0 %v4394_v55  ;;  %v3789_v55 = vld [vmem:[%s5300_s18] sm:$0x3]  ;;  %s4489_s18 = scalar_lea.vmem %s3860_s4, 64 }
0x109d   :  { %p4490_p0 = scmp.ne.s32.totalorder %s3860_s4, %s4489_s18  ;;  %p4495_p2 = scmp.lt.s32.totalorder %s4489_s18, %s4489_s18 }
0x109f   :  { %3751 = vmatpush1.bf16.msra.mxu0 %v4392_v57  ;;  %p4496_p3 = por %p4495_p2, %p4494_p1 }
0x10a1   :  { %p4497_p4 = pnand %p4496_p3, %p4490_p0 }
0x116d   :  { %v3536_v19 = vpop.f32.mrb[44].mxu0 }
0x116e   :  { %v3537_v22 = vadd.f32 %v3974_v18, %v3536_v19  ;;  %v4313_v23 = vpop.f32.mrb[45].mxu0 }
0x116f   :  { %v3539_v24 = vpop.f32.mrb[46].mxu0 }
0x1170   :  { %v3545_v25 = vmul.f32 0.044715, %v3537_v22  ;;  %v3540_v26 = vadd.f32 %v3974_v18, %v3539_v24  ;;  %v4314_v27 = vpop.f32.mrb[47].mxu0  ;;  %v3543_v10 = vmul.f32 0.5, %v3537_v22 }
0x1172   :  { %v3547_v59 = vmul.f32 %v3545_v25, %v3537_v22  ;;  %v3546_v28 = vmul.f32 0.044715, %v3540_v26  ;;  %v3544_v47 = vmul.f32 0.5, %v3540_v26 }
0x1174   :  { %v3549_v30 = vmul.f32 %v3547_v59, %v3537_v22  ;;  %v3548_v31 = vmul.f32 %v3546_v28, %v3540_v26 }
0x1176   :  { %v3551_v0 = vadd.f32 %v3549_v30, %v3537_v22  ;;  %v3550_v32 = vmul.f32 %v3548_v31, %v3540_v26  ;;  %v3996_v22 = vld [vmem:[%s5295_s13 + $0x1] ss:$0 sm:$0xff] }
0x1178   :  { %v3553_v33 = vmul.f32 0.7978846, %v3551_v0  ;;  %v3552_v9 = vadd.f32 %v3550_v32, %v3540_v26 }
0x117a   :  { %4479 = vtanh.f32 %v3553_v33  ;;  %v3554_v5 = vmul.f32 0.7978846, %v3552_v9  ;;  %v3707_v9 = vlaneseq }
0x117c   :  { %4481 = vtanh.f32 %v3554_v5  ;;  %v3708_v5 = vshrl.u32 %v3707_v9, 7 }
0x1184   :  { %v4480_v34 = vpop.eup %4479 }
0x1185   :  { %v3557_v61 = vadd.f32 1.0, %v4480_v34  ;;  %v3709_v34 = vsub.s32 0, %v3708_v5 }
0x1186   :  { %v4482_v62 = vpop.eup %4481 }
0x1187   :  { %v3558_v51 = vadd.f32 1.0, %v4482_v62  ;;  %v3559_v37 = vmul.f32 %v3557_v61, %v3543_v10  ;;  %v3705_v61 = vld [vmem:[%s5299_s17] sm:$0x3]  ;;  %v3713_v62 = vsub.s32 1, %v3708_v5 }
0x1188   :  { %v3710_v10 = vrot.slane %v3705_v61, %v3709_v34 }
0x1189   :  { %v3560_v13 = vmul.f32 %v3558_v51, %v3544_v47  ;;  %v3714_v47 = vrot.slane %v3705_v61, %v3713_v62 }
0x118b   :  { %v3561_v38 = vpack.c.bf16 %v3560_v13, %v3559_v37 }
0x118d   :  { %4324 = vmatmul.mubr.msk.bf16.vlgmr.msra.gmra.mrb[44].mxu1 %vm1838_vm5, %v3561_v38 }
0x1260   :  { %v3640_v41 = vpop.f32.mrb[44].mxu1 }
0x1261   :  { %v3641_v42 = vadd.f32 %v3987_v39, %v3640_v41  ;;  %v4325_v20 = vpop.f32.mrb[45].mxu1 }
0x1262   :  { %v3643_v21 = vpop.f32.mrb[46].mxu1 }
0x1263   :  { %v3647_v48 = vadd.f32 %v3641_v42, %v3471_v8  ;;  %v3644_v45 = vadd.f32 %v3987_v39, %v3643_v21  ;;  %v4326_v29 = vpop.f32.mrb[47].mxu1 }
0x1265   :  { %v3648_v43 = vadd.f32 %v3644_v45, %v3472_v11  ;;  %v3653_v44 = vsel %vm71_vm0, %v3647_v48, 0.0  ;;  %v3661_v46 = vmul.f32 %v3647_v48, %v3647_v48 }
0x1266   :  { %3654 = vadd.xlane.f32.xlu1 %v3653_v44 }
0x1267   :  { %v3656_v40 = vsel %vm71_vm0, %v3648_v43, 0.0  ;;  %v3662_v49 = vmul.f32 %v3648_v43, %v3648_v43  ;;  %v3663_v50 = vsel %vm71_vm0, %v3661_v46, 0.0 }
0x1268   :  { %3657 = vadd.xlane.f32.xlu0 %v3656_v40 }
0x1269   :  { %v3666_v52 = vsel %vm71_vm0, %v3662_v49, 0.0 }
0x126a   :  { %3664 = vadd.xlane.f32.xlu1 %v3663_v50 }
0x126c   :  { %3667 = vadd.xlane.f32.xlu0 %v3666_v52 }
0x12f3   :  { %v3655_v35 = vpop.xlane.xlu1 %3654 }
0x12f4   :  { %v3659_v36 = vmul.f32 0.03125, %v3655_v35 }
0x12f5   :  { %v3658_v58 = vpop.xlane.xlu0 %3657 }
0x12f6   :  { %v3660_v60 = vmul.f32 0.03125, %v3658_v58  ;;  %v3671_v1 = vmul.f32 %v3659_v36, %v3659_v36  ;;  %v3679_v14 = vsub.f32 %v3647_v48, %v3659_v36  ;;  %v3819_v36 = vrot.slane %v3789_v55, %v3709_v34 }
0x12f7   :  { %v3665_v63 = vpop.xlane.xlu1 %3664  ;;  %v3823_v58 = vrot.slane %v3789_v55, %v3713_v62 }
0x12f8   :  { %v3669_v2 = vmul.f32 0.03125, %v3665_v63  ;;  %v3672_v4 = vmul.f32 %v3660_v60, %v3660_v60  ;;  %v3680_v17 = vsub.f32 %v3648_v43, %v3660_v60 }
0x12f9   :  { %v3668_v3 = vpop.xlane.xlu0 %3667 }
0x12fa   :  { %v3673_v6 = vsub.f32 %v3669_v2, %v3671_v1  ;;  %v3670_v7 = vmul.f32 0.03125, %v3668_v3  ;;  %v3832_v2 = vrot.slane %v3790_v56, %v3709_v34  ;;  %v3836_v3 = vrot.slane %v3790_v56, %v3713_v62 }
0x12fc   :  { %v3675_v8 = vadd.f32 1e-12, %v3673_v6  ;;  %v3674_v11 = vsub.f32 %v3670_v7, %v3672_v4 }
0x12fe   :  { %4483 = vrsqrt.f32 %v3675_v8  ;;  %v3676_v12 = vadd.f32 1e-12, %v3674_v11 }
0x1300   :  { %4485 = vrsqrt.f32 %v3676_v12 }
0x1308   :  { %v4484_v15 = vpop.eup %4483 }
0x1309   :  { %v3681_v18 = vmul.f32 %v4484_v15, %v3679_v14 }
0x130a   :  { %v4486_v19 = vpop.eup %4485 }
0x130b   :  { %v3689_v23 = vmul.f32 %v3995_v16, %v3681_v18  ;;  %v3682_v24 = vmul.f32 %v4486_v19, %v3680_v17 }
0x130d   :  { %v3690_v25 = vmul.f32 %v3995_v16, %v3682_v24  ;;  %v3697_v26 = vadd.f32 %v3996_v22, %v3689_v23 }
0x130f   :  { %v3698_v27 = vadd.f32 %v3996_v22, %v3690_v25  ;;  %v3699_v59 = vpack.c.bf16 %v3697_v26, %v3697_v26 }
0x1311   :  { %v3700_v28 = vpack.c.bf16 %v3698_v27, %v3698_v27  ;;  %v3719_v31 = vunpack.c.l.b16 %v3699_v59 }
0x1313   :  { %v3720_v30 = vunpack.c.l.b16 %v3700_v28 }
0x1315   :  { %v3721_v0 = vrot.slane %v3720_v30, 7 }
0x1317   :  { %v3723_v32 = vsel %vm3722_vm6, %v3721_v0, %v3719_v31 }
0x1318   :  { %v3724_v33 = vpack.c.b16 %v3723_v32, %v3723_v32 }
0x131a   :  { %4001 = vmatmul.mubr.msk.bf16.vlgmr.msra.gmra.mrb[48].mxu0 %vm71_vm0, %v3724_v33 }
0x13ed   :  { %v3782_v51 = vpop.f32.mrb[48].mxu0 }
0x13ee   :  { %v3783_v37 = vadd.f32 %v3782_v51, %v3710_v10  ;;  %v3784_v13 = vpop.f32.mrb[49].mxu0 }
0x13ef   :  { %v3785_v38 = vadd.f32 %v3784_v13, %v3714_v47  ;;  %v3786_v39 = vpop.f32.mrb[50].mxu0 }
0x13f0   :  { %v3799_v41 = vmul.f32 %v3783_v37, %v3783_v37  ;;  %v3787_v42 = vpop.f32.mrb[51].mxu0  ;;  %v3792_v20 = vsel %vm3791_vm7, %v3783_v37, 0.0 }
0x13f1   :  { %v3800_v21 = vmul.f32 %v3785_v38, %v3785_v38  ;;  %v3793_v48 = vsel %vm3791_vm7, %v3785_v38, 0.0 }
0x13f2   :  { %v3794_v45 = vadd.f32 %v3793_v48, %v3792_v20  ;;  %v3801_v29 = vsel %vm3791_vm7, %v3799_v41, 0.0 }
0x13f3   :  { %v3802_v43 = vsel %vm3791_vm7, %v3800_v21, 0.0 }
0x13f4   :  { %3795 = vadd.xlane.f32.xlu0 %v3794_v45  ;;  %v3803_v44 = vadd.f32 %v3802_v43, %v3801_v29 }
0x13f6   :  { %3804 = vadd.xlane.f32.xlu1 %v3803_v44 }
0x1481   :  { %v3796_v46 = vpop.xlane.xlu0 %3795 }
0x1482   :  { %v3798_v40 = vmul.f32 0.00390625, %v3796_v46 }
0x1483   :  { %v3805_v49 = vpop.xlane.xlu1 %3804 }
0x1484   :  { %v3806_v50 = vmul.f32 0.00390625, %v3805_v49  ;;  %v3807_v52 = vmul.f32 %v3798_v40, %v3798_v40  ;;  %v3811_v57 = vsub.f32 %v3783_v37, %v3798_v40  ;;  %v3812_v35 = vsub.f32 %v3785_v38, %v3798_v40 }
0x1486   :  { %v3808_v53 = vsub.f32 %v3806_v50, %v3807_v52 }
0x1488   :  { %v3809_v54 = vadd.f32 1e-05, %v3808_v53 }
0x148a   :  { %4487 = vrsqrt.f32 %v3809_v54 }
0x1494   :  { %v4488_v60 = vpop.eup %4487 }
0x1495   :  { %v3813_v63 = vmul.f32 %v4488_v60, %v3811_v57  ;;  %v3814_v1 = vmul.f32 %v4488_v60, %v3812_v35 }
0x1497   :  { %v3826_v4 = vmul.f32 %v3819_v36, %v3813_v63  ;;  %v3827_v6 = vmul.f32 %v3823_v58, %v3814_v1 }
0x1499   :  { %v3839_v7 = vadd.f32 %v3832_v2, %v3826_v4  ;;  %v3840_v8 = vadd.f32 %v3836_v3, %v3827_v6 }
0x149b   :  { %v3843_v11 = vcombine.low %v3839_v7, %v3840_v8 }
0x149d   :  { %4002 = vst.sshfl [vmem:[#allocation2] sm:$0x33 pattern:$0x76325410] %v3843_v11 }
0x149e   :  { %4500 = shalt.err (!%p4497_p4)
}
0x149f   :  { %s4501_s7 = scalar_lea.hbm %s5302_s20, 64 }
0x14a0   :  { %p4502_p5 = scmp.ne.s32.totalorder %s5302_s20, %s4501_s7  ;;  %p4505_p6 = scmp.lt.u32.totalorder %s4501_s7, %s5302_s20 }
0x14a2   :  { %p4507_p7 = pnand %p4505_p6, %p4502_p5 }
0x14a4   :  { %4510 = shalt.err (!%p4507_p7)
}
0x14a5   :  { %3862 = dma.vmem_to_hbm [thread:$0]  %s3860_s4, 64, %s5302_s20, [#allocation3]  }
0x14a6   :  { %4511 = dma.done.wait [#allocation3], 64  }
0x14a7   :  { %4512 = vsyncadd [#allocation3], 4294967232 }
0x14a8   :  { %3866 = vsyncpa [#allocation3], 1 }

</bundles_post_ra>
